<compile_context>
chip_gen: v7x
topology: tpu7x:2x2x1
jax: 0.10.0
libtpu: 0.0.40
codegen_flags: <defaults>
</compile_context>

<pallas_src>
import jax
import jax.numpy as jnp
import numpy as np
from jax.experimental import pallas as pl
from jax.experimental.pallas import tpu as pltpu


def _round_up(x, m):
    return ((x + m - 1) // m) * m


def _pick_sg_block(HW, TG, target_n=512):
    """Smallest divisor of HW with SG_BLK*TG >= target_n (else largest divisor)."""
    want = max(1, -(-target_n // TG))
    divisors = [d for d in range(1, HW + 1) if HW % d == 0]
    ge = [d for d in divisors if d >= want]
    return min(ge) if ge else divisors[-1]


def _make_qaconv_kernel(A, B, W1, HW, TP, TG, Cp, SG_BLK):
    """A, B: folded BN/fc-bias/logit-BN affine; W1: sp-half fc weights baked as
    compile-time scalars.  The sg-half weights arrive as a small VMEM table so
    they can be dynamically indexed from inside the fori_loop."""
    M = HW * TP
    n_chunks = HW // SG_BLK

    def kernel(q_ref, k_ref, w2_ref, o_ref, msg_ref, dot2_ref):
        # q_ref   : (HW, TP, Cp) bf16  pre-normalized probe tile, sp-major
        # k_ref   : (HW, TG, Cp) bf16  pre-normalized gallery tile, sg-major
        # w2_ref  : (HW, TG)  f32      fc weights (sg-half), lane-replicated
        # o_ref   : (TP, TG)  f32      sigmoid scores (lane-dense block)
        # msg_ref : (HW*TP, TG) f32    running max over sg (rows sp-major)
        # dot2_ref: (TP, TG)  f32      running sum_sg w2[sg] * max_sp
        qm = q_ref[...].reshape(M, Cp)    # free: TP is a multiple of 16 (bf16 tile)

        def chunk(ci):
            # One wide MXU push: (M, Cp) x (Cp, SG_BLK*TG), f32 accumulation.
            krhs = k_ref[pl.ds(ci * SG_BLK, SG_BLK), :, :].reshape(SG_BLK * TG, Cp)
            c = jax.lax.dot_general(
                qm, krhs, (((1,), (1,)), ((), ())),
                preferred_element_type=jnp.float32)            # (M, SG_BLK*TG)
            cmax = None     # in-register max over the chunk's sg positions
            cdot2 = None    # sum over the chunk of w2[sg] * max_sp
            for sgb in range(SG_BLK):
                part = c[:, sgb * TG:(sgb + 1) * TG]           # whole-vreg lane slice
                cmax = part if cmax is None else jnp.maximum(cmax, part)
                # max over sp = reduce over the leading slab axis -> pure VPU.
                colmax = jnp.max(part.reshape(HW, TP, TG), axis=0)     # (TP, TG)
                w2row = w2_ref[pl.ds(ci * SG_BLK + sgb, 1), :]         # (1, TG)
                term = w2row * colmax
                cdot2 = term if cdot2 is None else cdot2 + term
            return cmax, cdot2

        # Peeled first chunk initializes the accumulators (no -inf / zero stores).
        cmax0, cdot20 = chunk(0)
        msg_ref[...] = cmax0
        dot2_ref[...] = cdot20

        def body(ci, carry):
            cmax, cdot2 = chunk(ci)
            msg_ref[...] = jnp.maximum(msg_ref[...], cmax)     # one RMW per chunk
            dot2_ref[...] = dot2_ref[...] + cdot2
            return carry

        jax.lax.fori_loop(1, n_chunks, body, 0)

        # Epilogue: dot1 = sum_sp w1[sp] * max_sg.  sp-major rows -> static
        # sublane-aligned slices with scalar-immediate weights (pure VPU).
        dot1 = None
        for sp in range(HW):
            term = W1[sp] * msg_ref[pl.ds(sp * TP, TP), :]
            dot1 = term if dot1 is None else dot1 + term

        logits = A * (dot1 + dot2_ref[...]) + B                # folded affines
        o_ref[...] = jax.nn.sigmoid(logits * 0.1).astype(o_ref.dtype)

    return kernel


def make_qaconv(gal_fea, bn_params, fc_w, fc_b, logit_bn_params, gal_block=256):
    """Returns a forward(prob_fea) callable reproducing QAConv.forward
    (loss layers folded in eval mode)."""
    G, C, H, W = gal_fea.shape
    HW = H * W

    # --- fold eval-mode BatchNorm1d(1) + Linear bias + logit_bn into A, B ---
    bn_g, bn_b, bn_m, bn_v, bn_eps = bn_params
    lg_g, lg_b, lg_m, lg_v, lg_eps = logit_bn_params
    a = bn_g / np.sqrt(bn_v + bn_eps)
    b = bn_b - a * bn_m
    cg = lg_g / np.sqrt(lg_v + lg_eps)
    d = lg_b - cg * lg_m
    wf = np.asarray(fc_w, np.float32).reshape(2 * HW)
    A = float(cg * a)
    B = float(cg * (b * float(wf.sum()) + float(fc_b)) + d)
    W1 = tuple(float(v) for v in wf[:HW])        # pairs with sp-indexed max (over sg)
    w2 = wf[HW:]                                 # pairs with sg-indexed max (over sp)

    # --- tile sizes ---
    # Contraction dim: only pad when C > 128 and not already lane aligned.
    Cp = C if (C <= 128 or C % 128 == 0) else _round_up(C, 128)
    # Gallery tile: default 256 (full 256-wide MXU on v6e/v7x), lane-dense.
    Gp0 = _round_up(G, 128)
    TG = min(int(gal_block), Gp0)
    assert TG % 128 == 0, "gallery tile must be lane-dense (multiple of 128)"
    Gp = _round_up(G, TG)
    # sg chunk so the per-push matmul N = SG_BLK*TG >= ~512 (feeds v5e's 4 MXUs).
    SG_BLK = _pick_sg_block(HW, TG)

    # --- gallery preprocessing (once): L2-normalize over C, sg-major, bf16 ---
    g32 = jnp.asarray(gal_fea, jnp.float32)
    g_inv = jax.lax.rsqrt(jnp.maximum(jnp.sum(g32 * g32, axis=1, keepdims=True),
                                      1e-24))
    gk = jnp.transpose(g32 * g_inv, (2, 3, 0, 1)).reshape(HW, G, C)
    gk = jnp.pad(gk, ((0, 0), (0, Gp - G), (0, Cp - C))).astype(jnp.bfloat16)

    # fc weights (sg-half) replicated across lanes: tiny VMEM table, dynamically
    # indexable from inside the fori_loop.
    w2v = jnp.tile(jnp.asarray(w2, jnp.float32).reshape(HW, 1), (1, TG))

    @jax.jit
    def forward(prob_fea):
        P = prob_fea.shape[0]
        assert prob_fea.shape[1:] == (C, H, W)

        # Probe tile: target ~1024 matmul rows, bf16 16-row alignment, but do
        # not pad (much) past the actual probe count.
        tp_target = max(16, _round_up(max(1, 1024 // HW), 16))
        TP = min(tp_target, _round_up(P, 16))
        Pp = _round_up(P, TP)

        # Probe normalization hoisted out of the kernel; sp-major layout.
        p32 = jnp.asarray(prob_fea, jnp.float32)
        p_inv = jax.lax.rsqrt(jnp.maximum(
            jnp.sum(p32 * p32, axis=1, keepdims=True), 1e-24))
        q = jnp.transpose(p32 * p_inv, (2, 3, 0, 1)).reshape(HW, P, C)
        q = jnp.pad(q, ((0, 0), (0, Pp - P), (0, Cp - C))).astype(jnp.bfloat16)

        kernel = _make_qaconv_kernel(A, B, W1, HW, TP, TG, Cp, SG_BLK)
        grid = (Pp // TP, Gp // TG)              # gallery axis innermost

        # VMEM budget: double-buffered input/output tiles + scratch + matmul temps.
        vmem_need = (2 * HW * TP * Cp * 2        # probe tile (bf16), x2 buffers
                     + 2 * HW * TG * Cp * 2      # gallery tile (bf16), x2 buffers
                     + 2 * TP * TG * 4           # output tile, x2 buffers
                     + HW * TG * 4               # w2 table
                     + HW * TP * TG * 4          # msg scratch
                     + TP * TG * 4               # dot2 scratch
                     + 2 * HW * TP * SG_BLK * TG * 4)   # matmul result temps
        vmem_limit = int(min(max(vmem_need * 5 // 4 + (2 << 20), 8 << 20), 48 << 20))

        out = pl.pallas_call(
            kernel,
            out_shape=jax.ShapeDtypeStruct((Pp, Gp), jnp.float32),
            grid_spec=pltpu.PrefetchScalarGridSpec(
                num_scalar_prefetch=0,
                grid=grid,
                in_specs=[
                    # probe tile: resident across the inner gallery sweep
                    pl.BlockSpec((HW, TP, Cp), lambda i, j: (0, i, 0)),
                    # gallery tile: streams along the inner axis
                    pl.BlockSpec((HW, TG, Cp), lambda i, j: (0, j, 0)),
                    # w2 table: constant block
                    pl.BlockSpec((HW, TG), lambda i, j: (0, 0)),
                ],
                out_specs=pl.BlockSpec((TP, TG), lambda i, j: (i, j)),
                scratch_shapes=[
                    pltpu.VMEM((HW * TP, TG), jnp.float32),  # running max over sg
                    pltpu.VMEM((TP, TG), jnp.float32),       # w2-weighted sp-max
                ],
            ),
            compiler_params=pltpu.CompilerParams(
                dimension_semantics=("parallel", "parallel"),
                vmem_limit_bytes=vmem_limit,
            ),
        )(q, gk, w2v)

        return out[:P, :G]

    return forward


def reference_forward(prob_fea, gal_fea, bn_params, fc_w, fc_b, logit_bn_params):
    """Pure-JAX f32 re-implementation of the PyTorch forward (eval-mode BN)."""
    G, C, H, W = gal_fea.shape
    HW = H * W
    P = prob_fea.shape[0]

    def l2n(x):  # F.normalize over dim=1
        n = jnp.sqrt(jnp.sum(x * x, axis=1, keepdims=True))
        return x / jnp.maximum(n, 1e-12)

    k = jnp.transpose(l2n(gal_fea), (0, 2, 3, 1)).reshape(G, HW, C)
    q = jnp.transpose(l2n(prob_fea), (0, 2, 3, 1)).reshape(P, HW, C)

    # s[p, g, sg, sp]
    s = jnp.einsum("pxc,gyc->pgyx", q, k)
    m1 = jnp.max(s, axis=2)                      # over sg -> indexed by sp
    m2 = jnp.max(s, axis=3)                      # over sp -> indexed by sg
    raw = jnp.concatenate([m1, m2], axis=-1)     # (P, G, 2*HW)

    bn_g, bn_b, bn_m, bn_v, bn_eps = bn_params
    lg_g, lg_b, lg_m, lg_v, lg_eps = logit_bn_params
    a = bn_g / np.sqrt(bn_v + bn_eps)
    b = bn_b - a * bn_m
    c = lg_g / np.sqrt(lg_v + lg_eps)
    d = lg_b - c * lg_m

    bn_out = a * raw + b
    fc_out = jnp.einsum("pgk,k->pg", bn_out, jnp.asarray(fc_w).reshape(-1)) + fc_b
    logits = c * fc_out + d
    return jax.nn.sigmoid(logits / 10.0)


if __name__ == "__main__":
    # Small shapes consistent with the module: gal_fea (G, C, H, W), prob_fea (P, C, H, W)
    G, C, H, W = 8, 64, 4, 4
    P = 16
    HW = H * W

    key = jax.random.PRNGKey(0)
    k1, k2, k3, k4 = jax.random.split(key, 4)
    gal_fea = jax.random.normal(k1, (G, C, H, W), jnp.float32)
    prob_fea = jax.random.normal(k2, (P, C, H, W), jnp.float32)

    # Deterministic loss-layer parameters (eval-mode BatchNorm stats + Linear).
    bn_params = (0.9, 0.1, 0.05, 1.3, 1e-5)        # gamma, beta, mean, var, eps
    logit_bn_params = (1.1, -0.05, 0.02, 0.8, 1e-5)
    fc_w = jax.random.normal(k3, (1, 2 * HW), jnp.float32) * 0.1
    fc_b = float(jax.random.normal(k4, ()) * 0.1)

    qaconv = make_qaconv(gal_fea, bn_params, fc_w, fc_b, logit_bn_params)

    out = qaconv(prob_fea)
    out = jax.block_until_ready(out)

    ref = reference_forward(prob_fea, gal_fea, bn_params, fc_w, fc_b, logit_bn_params)
    ref = jax.block_until_ready(ref)

    # bf16 matmul operands with f32 accumulation -> slightly looser tolerance.
    np.testing.assert_allclose(np.asarray(out), np.asarray(ref), rtol=2e-3, atol=2e-3)
    print("KERNEL_OK")
</pallas_src>

<mosaic_0001>
module attributes {stable_mosaic.version = 11 : i64} {
  func.func @kernel(%arg0: i32, %arg1: i32, %arg2: memref<16x16x64xbf16, #tpu.memory_space<vmem>>, %arg3: memref<16x128x64xbf16, #tpu.memory_space<vmem>>, %arg4: memref<16x128xf32, #tpu.memory_space<vmem>>, %arg5: memref<16x128xf32, #tpu.memory_space<vmem>>, %arg6: memref<256x128xf32, #tpu.memory_space<vmem>>, %arg7: memref<16x128xf32, #tpu.memory_space<vmem>>) attributes {dimension_semantics = [#tpu.dimension_semantics<parallel>, #tpu.dimension_semantics<parallel>], iteration_bounds = array<i64: 1, 1>, scalar_prefetch = 0 : i64, scratch_operands = 2 : i64, tpu.core_type = #tpu.core_type<tc>, window_params = [{transform_indices = @transform_0, window_bounds = array<i64: 16, 16, 64>}, {transform_indices = @transform_1, window_bounds = array<i64: 16, 128, 64>}, {pipeline_mode = #tpu.pipeline_mode<synchronous>, transform_indices = @transform_2, window_bounds = array<i64: 16, 128>}, {transform_indices = @transform_3, window_bounds = array<i64: 16, 128>}]} {
    %c0 = arith.constant 0 : index
    %c0_0 = arith.constant 0 : index
    %c0_1 = arith.constant 0 : index
    %0 = vector.load %arg2[%c0, %c0_0, %c0_1] : memref<16x16x64xbf16, #tpu.memory_space<vmem>>, vector<16x16x64xbf16>
    %1 = vector.shape_cast %0 : vector<16x16x64xbf16> to vector<256x64xbf16>
    %c0_2 = arith.constant 0 : index
    %c0_3 = arith.constant 0 : index
    %c0_4 = arith.constant 0 : index
    %2 = vector.load %arg3[%c0_2, %c0_3, %c0_4] : memref<16x128x64xbf16, #tpu.memory_space<vmem>>, vector<4x128x64xbf16>
    %3 = vector.shape_cast %2 : vector<4x128x64xbf16> to vector<512x64xbf16>
    %cst = arith.constant dense<0.000000e+00> : vector<256x512xf32>
    %4 = tpu.matmul %1, %3, %cst {dimension_numbers = #tpu.dot_dimension_numbers<[1], [1], [0], [0], [0, 0, 1, 0], [], []>} : vector<256x64xbf16>, vector<512x64xbf16>, vector<256x512xf32> -> vector<256x512xf32>
    %5 = vector.extract_strided_slice %4 {offsets = [0, 0], sizes = [256, 128], strides = [1, 1]} : vector<256x512xf32> to vector<256x128xf32>
    %6 = vector.shape_cast %5 : vector<256x128xf32> to vector<16x16x128xf32>
    %cst_5 = arith.constant dense<0xFF800000> : vector<16x128xf32>
    %7 = vector.multi_reduction <maximumf>, %6, %cst_5 [0] : vector<16x16x128xf32> to vector<16x128xf32>
    %c0_6 = arith.constant 0 : index
    %c0_7 = arith.constant 0 : index
    %8 = vector.load %arg4[%c0_6, %c0_7] : memref<16x128xf32, #tpu.memory_space<vmem>>, vector<1x128xf32>
    %9 = vector.broadcast %8 : vector<1x128xf32> to vector<16x128xf32>
    %10 = arith.mulf %9, %7 : vector<16x128xf32>
    %11 = vector.extract_strided_slice %4 {offsets = [0, 128], sizes = [256, 128], strides = [1, 1]} : vector<256x512xf32> to vector<256x128xf32>
    %12 = arith.maximumf %5, %11 : vector<256x128xf32>
    %13 = vector.shape_cast %11 : vector<256x128xf32> to vector<16x16x128xf32>
    %cst_8 = arith.constant dense<0xFF800000> : vector<16x128xf32>
    %14 = vector.multi_reduction <maximumf>, %13, %cst_8 [0] : vector<16x16x128xf32> to vector<16x128xf32>
    %c1 = arith.constant 1 : index
    %c0_9 = arith.constant 0 : index
    %15 = vector.load %arg4[%c1, %c0_9] : memref<16x128xf32, #tpu.memory_space<vmem>>, vector<1x128xf32>
    %16 = vector.broadcast %15 : vector<1x128xf32> to vector<16x128xf32>
    %17 = arith.mulf %16, %14 : vector<16x128xf32>
    %18 = arith.addf %10, %17 : vector<16x128xf32>
    %19 = vector.extract_strided_slice %4 {offsets = [0, 256], sizes = [256, 128], strides = [1, 1]} : vector<256x512xf32> to vector<256x128xf32>
    %20 = arith.maximumf %12, %19 : vector<256x128xf32>
    %21 = vector.shape_cast %19 : vector<256x128xf32> to vector<16x16x128xf32>
    %cst_10 = arith.constant dense<0xFF800000> : vector<16x128xf32>
    %22 = vector.multi_reduction <maximumf>, %21, %cst_10 [0] : vector<16x16x128xf32> to vector<16x128xf32>
    %c2 = arith.constant 2 : index
    %c0_11 = arith.constant 0 : index
    %23 = vector.load %arg4[%c2, %c0_11] : memref<16x128xf32, #tpu.memory_space<vmem>>, vector<1x128xf32>
    %24 = vector.broadcast %23 : vector<1x128xf32> to vector<16x128xf32>
    %25 = arith.mulf %24, %22 : vector<16x128xf32>
    %26 = arith.addf %18, %25 : vector<16x128xf32>
    %27 = vector.extract_strided_slice %4 {offsets = [0, 384], sizes = [256, 128], strides = [1, 1]} : vector<256x512xf32> to vector<256x128xf32>
    %28 = arith.maximumf %20, %27 : vector<256x128xf32>
    %29 = vector.shape_cast %27 : vector<256x128xf32> to vector<16x16x128xf32>
    %cst_12 = arith.constant dense<0xFF800000> : vector<16x128xf32>
    %30 = vector.multi_reduction <maximumf>, %29, %cst_12 [0] : vector<16x16x128xf32> to vector<16x128xf32>
    %c3 = arith.constant 3 : index
    %c0_13 = arith.constant 0 : index
    %31 = vector.load %arg4[%c3, %c0_13] : memref<16x128xf32, #tpu.memory_space<vmem>>, vector<1x128xf32>
    %32 = vector.broadcast %31 : vector<1x128xf32> to vector<16x128xf32>
    %33 = arith.mulf %32, %30 : vector<16x128xf32>
    %34 = arith.addf %26, %33 : vector<16x128xf32>
    %c0_14 = arith.constant 0 : index
    %c0_15 = arith.constant 0 : index
    %35 = vector.load %arg6[%c0_14, %c0_15] : memref<256x128xf32, #tpu.memory_space<vmem>>, vector<256x128xf32>
    tpu.vector_store %arg6[%c0_14, %c0_15], %28 {strides = array<i32>} : memref<256x128xf32, #tpu.memory_space<vmem>>, vector<256x128xf32>,
    %c0_16 = arith.constant 0 : index
    %c0_17 = arith.constant 0 : index
    %36 = vector.load %arg7[%c0_16, %c0_17] : memref<16x128xf32, #tpu.memory_space<vmem>>, vector<16x128xf32>
    tpu.vector_store %arg7[%c0_16, %c0_17], %34 {strides = array<i32>} : memref<16x128xf32, #tpu.memory_space<vmem>>, vector<16x128xf32>,
    %c1_i32 = arith.constant 1 : i32
    %c3_i32 = arith.constant 3 : i32
    %37 = arith.addi %c1_i32, %c3_i32 : i32
    %c1_i32_18 = arith.constant 1 : i32
    scf.for %arg8 = %c1_i32 to %37 step %c1_i32_18  : i32 {
      %c4_i32 = arith.constant 4 : i32
      %115 = arith.muli %arg8, %c4_i32 : i32
      %116 = arith.index_cast %115 : i32 to index
      %c0_61 = arith.constant 0 : index
      %c0_62 = arith.constant 0 : index
      %117 = vector.load %arg3[%116, %c0_61, %c0_62] : memref<16x128x64xbf16, #tpu.memory_space<vmem>>, vector<4x128x64xbf16>
      %118 = vector.shape_cast %117 : vector<4x128x64xbf16> to vector<512x64xbf16>
      %cst_63 = arith.constant dense<0.000000e+00> : vector<256x512xf32>
      %119 = tpu.matmul %1, %118, %cst_63 {dimension_numbers = #tpu.dot_dimension_numbers<[1], [1], [0], [0], [0, 0, 1, 0], [], []>} : vector<256x64xbf16>, vector<512x64xbf16>, vector<256x512xf32> -> vector<256x512xf32>
      %120 = vector.extract_strided_slice %119 {offsets = [0, 0], sizes = [256, 128], strides = [1, 1]} : vector<256x512xf32> to vector<256x128xf32>
      %121 = vector.shape_cast %120 : vector<256x128xf32> to vector<16x16x128xf32>
      %cst_64 = arith.constant dense<0xFF800000> : vector<16x128xf32>
      %122 = vector.multi_reduction <maximumf>, %121, %cst_64 [0] : vector<16x16x128xf32> to vector<16x128xf32>
      %c4_i32_65 = arith.constant 4 : i32
      %123 = arith.muli %arg8, %c4_i32_65 : i32
      %c0_i32 = arith.constant 0 : i32
      %124 = arith.addi %123, %c0_i32 : i32
      %125 = arith.index_cast %124 : i32 to index
      %c0_66 = arith.constant 0 : index
      %126 = vector.load %arg4[%125, %c0_66] : memref<16x128xf32, #tpu.memory_space<vmem>>, vector<1x128xf32>
      %127 = vector.broadcast %126 : vector<1x128xf32> to vector<16x128xf32>
      %128 = arith.mulf %127, %122 : vector<16x128xf32>
      %129 = vector.extract_strided_slice %119 {offsets = [0, 128], sizes = [256, 128], strides = [1, 1]} : vector<256x512xf32> to vector<256x128xf32>
      %130 = arith.maximumf %120, %129 : vector<256x128xf32>
      %131 = vector.shape_cast %129 : vector<256x128xf32> to vector<16x16x128xf32>
      %cst_67 = arith.constant dense<0xFF800000> : vector<16x128xf32>
      %132 = vector.multi_reduction <maximumf>, %131, %cst_67 [0] : vector<16x16x128xf32> to vector<16x128xf32>
      %c4_i32_68 = arith.constant 4 : i32
      %133 = arith.muli %arg8, %c4_i32_68 : i32
      %c1_i32_69 = arith.constant 1 : i32
      %134 = arith.addi %133, %c1_i32_69 : i32
      %135 = arith.index_cast %134 : i32 to index
      %c0_70 = arith.constant 0 : index
      %136 = vector.load %arg4[%135, %c0_70] : memref<16x128xf32, #tpu.memory_space<vmem>>, vector<1x128xf32>
      %137 = vector.broadcast %136 : vector<1x128xf32> to vector<16x128xf32>
      %138 = arith.mulf %137, %132 : vector<16x128xf32>
      %139 = arith.addf %128, %138 : vector<16x128xf32>
      %140 = vector.extract_strided_slice %119 {offsets = [0, 256], sizes = [256, 128], strides = [1, 1]} : vector<256x512xf32> to vector<256x128xf32>
      %141 = arith.maximumf %130, %140 : vector<256x128xf32>
      %142 = vector.shape_cast %140 : vector<256x128xf32> to vector<16x16x128xf32>
      %cst_71 = arith.constant dense<0xFF800000> : vector<16x128xf32>
      %143 = vector.multi_reduction <maximumf>, %142, %cst_71 [0] : vector<16x16x128xf32> to vector<16x128xf32>
      %c4_i32_72 = arith.constant 4 : i32
      %144 = arith.muli %arg8, %c4_i32_72 : i32
      %c2_i32 = arith.constant 2 : i32
      %145 = arith.addi %144, %c2_i32 : i32
      %146 = arith.index_cast %145 : i32 to index
      %c0_73 = arith.constant 0 : index
      %147 = vector.load %arg4[%146, %c0_73] : memref<16x128xf32, #tpu.memory_space<vmem>>, vector<1x128xf32>
      %148 = vector.broadcast %147 : vector<1x128xf32> to vector<16x128xf32>
      %149 = arith.mulf %148, %143 : vector<16x128xf32>
      %150 = arith.addf %139, %149 : vector<16x128xf32>
      %151 = vector.extract_strided_slice %119 {offsets = [0, 384], sizes = [256, 128], strides = [1, 1]} : vector<256x512xf32> to vector<256x128xf32>
      %152 = arith.maximumf %141, %151 : vector<256x128xf32>
      %153 = vector.shape_cast %151 : vector<256x128xf32> to vector<16x16x128xf32>
      %cst_74 = arith.constant dense<0xFF800000> : vector<16x128xf32>
      %154 = vector.multi_reduction <maximumf>, %153, %cst_74 [0] : vector<16x16x128xf32> to vector<16x128xf32>
      %c4_i32_75 = arith.constant 4 : i32
      %155 = arith.muli %arg8, %c4_i32_75 : i32
      %c3_i32_76 = arith.constant 3 : i32
      %156 = arith.addi %155, %c3_i32_76 : i32
      %157 = arith.index_cast %156 : i32 to index
      %c0_77 = arith.constant 0 : index
      %158 = vector.load %arg4[%157, %c0_77] : memref<16x128xf32, #tpu.memory_space<vmem>>, vector<1x128xf32>
      %159 = vector.broadcast %158 : vector<1x128xf32> to vector<16x128xf32>
      %160 = arith.mulf %159, %154 : vector<16x128xf32>
      %161 = arith.addf %150, %160 : vector<16x128xf32>
      %c0_78 = arith.constant 0 : index
      %c0_79 = arith.constant 0 : index
      %162 = vector.load %arg6[%c0_78, %c0_79] : memref<256x128xf32, #tpu.memory_space<vmem>>, vector<256x128xf32>
      %163 = arith.maximumf %162, %152 : vector<256x128xf32>
      %c0_80 = arith.constant 0 : index
      %c0_81 = arith.constant 0 : index
      %164 = vector.load %arg6[%c0_80, %c0_81] : memref<256x128xf32, #tpu.memory_space<vmem>>, vector<256x128xf32>
      tpu.vector_store %arg6[%c0_80, %c0_81], %163 {strides = array<i32>} : memref<256x128xf32, #tpu.memory_space<vmem>>, vector<256x128xf32>,
      %c0_82 = arith.constant 0 : index
      %c0_83 = arith.constant 0 : index
      %165 = vector.load %arg7[%c0_82, %c0_83] : memref<16x128xf32, #tpu.memory_space<vmem>>, vector<16x128xf32>
      %166 = arith.addf %165, %161 : vector<16x128xf32>
      %c0_84 = arith.constant 0 : index
      %c0_85 = arith.constant 0 : index
      %167 = vector.load %arg7[%c0_84, %c0_85] : memref<16x128xf32, #tpu.memory_space<vmem>>, vector<16x128xf32>
      tpu.vector_store %arg7[%c0_84, %c0_85], %166 {strides = array<i32>} : memref<16x128xf32, #tpu.memory_space<vmem>>, vector<16x128xf32>,
    }
    %c3_i32_19 = arith.constant 3 : i32
    %c0_20 = arith.constant 0 : index
    %c0_21 = arith.constant 0 : index
    %38 = vector.load %arg6[%c0_20, %c0_21] : memref<256x128xf32, #tpu.memory_space<vmem>>, vector<16x128xf32>
    %cst_22 = arith.constant 0.1295636 : f32
    %39 = vector.broadcast %cst_22 : f32 to vector<16x128xf32>
    %40 = arith.mulf %39, %38 : vector<16x128xf32>
    %c16 = arith.constant 16 : index
    %c0_23 = arith.constant 0 : index
    %41 = vector.load %arg6[%c16, %c0_23] : memref<256x128xf32, #tpu.memory_space<vmem>>, vector<16x128xf32>
    %cst_24 = arith.constant 0.135501057 : f32
    %42 = vector.broadcast %cst_24 : f32 to vector<16x128xf32>
    %43 = arith.mulf %42, %41 : vector<16x128xf32>
    %44 = arith.addf %40, %43 : vector<16x128xf32>
    %c32 = arith.constant 32 : index
    %c0_25 = arith.constant 0 : index
    %45 = vector.load %arg6[%c32, %c0_25] : memref<256x128xf32, #tpu.memory_space<vmem>>, vector<16x128xf32>
    %cst_26 = arith.constant -0.0409605578 : f32
    %46 = vector.broadcast %cst_26 : f32 to vector<16x128xf32>
    %47 = arith.mulf %46, %45 : vector<16x128xf32>
    %48 = arith.addf %44, %47 : vector<16x128xf32>
    %c48 = arith.constant 48 : index
    %c0_27 = arith.constant 0 : index
    %49 = vector.load %arg6[%c48, %c0_27] : memref<256x128xf32, #tpu.memory_space<vmem>>, vector<16x128xf32>
    %cst_28 = arith.constant -0.077188544 : f32
    %50 = vector.broadcast %cst_28 : f32 to vector<16x128xf32>
    %51 = arith.mulf %50, %49 : vector<16x128xf32>
    %52 = arith.addf %48, %51 : vector<16x128xf32>
    %c64 = arith.constant 64 : index
    %c0_29 = arith.constant 0 : index
    %53 = vector.load %arg6[%c64, %c0_29] : memref<256x128xf32, #tpu.memory_space<vmem>>, vector<16x128xf32>
    %cst_30 = arith.constant 0.0380941741 : f32
    %54 = vector.broadcast %cst_30 : f32 to vector<16x128xf32>
    %55 = arith.mulf %54, %53 : vector<16x128xf32>
    %56 = arith.addf %52, %55 : vector<16x128xf32>
    %c80 = arith.constant 80 : index
    %c0_31 = arith.constant 0 : index
    %57 = vector.load %arg6[%c80, %c0_31] : memref<256x128xf32, #tpu.memory_space<vmem>>, vector<16x128xf32>
    %cst_32 = arith.constant 0.00188891904 : f32
    %58 = vector.broadcast %cst_32 : f32 to vector<16x128xf32>
    %59 = arith.mulf %58, %57 : vector<16x128xf32>
    %60 = arith.addf %56, %59 : vector<16x128xf32>
    %c96 = arith.constant 96 : index
    %c0_33 = arith.constant 0 : index
    %61 = vector.load %arg6[%c96, %c0_33] : memref<256x128xf32, #tpu.memory_space<vmem>>, vector<16x128xf32>
    %cst_34 = arith.constant 0.0574556552 : f32
    %62 = vector.broadcast %cst_34 : f32 to vector<16x128xf32>
    %63 = arith.mulf %62, %61 : vector<16x128xf32>
    %64 = arith.addf %60, %63 : vector<16x128xf32>
    %c112 = arith.constant 112 : index
    %c0_35 = arith.constant 0 : index
    %65 = vector.load %arg6[%c112, %c0_35] : memref<256x128xf32, #tpu.memory_space<vmem>>, vector<16x128xf32>
    %cst_36 = arith.constant -0.0753278956 : f32
    %66 = vector.broadcast %cst_36 : f32 to vector<16x128xf32>
    %67 = arith.mulf %66, %65 : vector<16x128xf32>
    %68 = arith.addf %64, %67 : vector<16x128xf32>
    %c128 = arith.constant 128 : index
    %c0_37 = arith.constant 0 : index
    %69 = vector.load %arg6[%c128, %c0_37] : memref<256x128xf32, #tpu.memory_space<vmem>>, vector<16x128xf32>
    %cst_38 = arith.constant 0.0230166223 : f32
    %70 = vector.broadcast %cst_38 : f32 to vector<16x128xf32>
    %71 = arith.mulf %70, %69 : vector<16x128xf32>
    %72 = arith.addf %68, %71 : vector<16x128xf32>
    %c144 = arith.constant 144 : index
    %c0_39 = arith.constant 0 : index
    %73 = vector.load %arg6[%c144, %c0_39] : memref<256x128xf32, #tpu.memory_space<vmem>>, vector<16x128xf32>
    %cst_40 = arith.constant -0.148934364 : f32
    %74 = vector.broadcast %cst_40 : f32 to vector<16x128xf32>
    %75 = arith.mulf %74, %73 : vector<16x128xf32>
    %76 = arith.addf %72, %75 : vector<16x128xf32>
    %c160 = arith.constant 160 : index
    %c0_41 = arith.constant 0 : index
    %77 = vector.load %arg6[%c160, %c0_41] : memref<256x128xf32, #tpu.memory_space<vmem>>, vector<16x128xf32>
    %cst_42 = arith.constant -0.0914319679 : f32
    %78 = vector.broadcast %cst_42 : f32 to vector<16x128xf32>
    %79 = arith.mulf %78, %77 : vector<16x128xf32>
    %80 = arith.addf %76, %79 : vector<16x128xf32>
    %c176 = arith.constant 176 : index
    %c0_43 = arith.constant 0 : index
    %81 = vector.load %arg6[%c176, %c0_43] : memref<256x128xf32, #tpu.memory_space<vmem>>, vector<16x128xf32>
    %cst_44 = arith.constant 0.176612064 : f32
    %82 = vector.broadcast %cst_44 : f32 to vector<16x128xf32>
    %83 = arith.mulf %82, %81 : vector<16x128xf32>
    %84 = arith.addf %80, %83 : vector<16x128xf32>
    %c192 = arith.constant 192 : index
    %c0_45 = arith.constant 0 : index
    %85 = vector.load %arg6[%c192, %c0_45] : memref<256x128xf32, #tpu.memory_space<vmem>>, vector<16x128xf32>
    %cst_46 = arith.constant -0.095966354 : f32
    %86 = vector.broadcast %cst_46 : f32 to vector<16x128xf32>
    %87 = arith.mulf %86, %85 : vector<16x128xf32>
    %88 = arith.addf %84, %87 : vector<16x128xf32>
    %c208 = arith.constant 208 : index
    %c0_47 = arith.constant 0 : index
    %89 = vector.load %arg6[%c208, %c0_47] : memref<256x128xf32, #tpu.memory_space<vmem>>, vector<16x128xf32>
    %cst_48 = arith.constant -0.0431319959 : f32
    %90 = vector.broadcast %cst_48 : f32 to vector<16x128xf32>
    %91 = arith.mulf %90, %89 : vector<16x128xf32>
    %92 = arith.addf %88, %91 : vector<16x128xf32>
    %c224 = arith.constant 224 : index
    %c0_49 = arith.constant 0 : index
    %93 = vector.load %arg6[%c224, %c0_49] : memref<256x128xf32, #tpu.memory_space<vmem>>, vector<16x128xf32>
    %cst_50 = arith.constant 0.0815238952 : f32
    %94 = vector.broadcast %cst_50 : f32 to vector<16x128xf32>
    %95 = arith.mulf %94, %93 : vector<16x128xf32>
    %96 = arith.addf %92, %95 : vector<16x128xf32>
    %c240 = arith.constant 240 : index
    %c0_51 = arith.constant 0 : index
    %97 = vector.load %arg6[%c240, %c0_51] : memref<256x128xf32, #tpu.memory_space<vmem>>, vector<16x128xf32>
    %cst_52 = arith.constant 0.119967394 : f32
    %98 = vector.broadcast %cst_52 : f32 to vector<16x128xf32>
    %99 = arith.mulf %98, %97 : vector<16x128xf32>
    %100 = arith.addf %96, %99 : vector<16x128xf32>
    %c0_53 = arith.constant 0 : index
    %c0_54 = arith.constant 0 : index
    %101 = vector.load %arg7[%c0_53, %c0_54] : memref<16x128xf32, #tpu.memory_space<vmem>>, vector<16x128xf32>
    %102 = arith.addf %100, %101 : vector<16x128xf32>
    %cst_55 = arith.constant 0.970765054 : f32
    %103 = vector.broadcast %cst_55 : f32 to vector<16x128xf32>
    %104 = arith.mulf %103, %102 : vector<16x128xf32>
    %cst_56 = arith.constant -0.137753353 : f32
    %105 = vector.broadcast %cst_56 : f32 to vector<16x128xf32>
    %106 = arith.addf %104, %105 : vector<16x128xf32>
    %cst_57 = arith.constant 1.000000e-01 : f32
    %107 = vector.broadcast %cst_57 : f32 to vector<16x128xf32>
    %108 = arith.mulf %106, %107 : vector<16x128xf32>
    %109 = arith.negf %108 : vector<16x128xf32>
    %110 = math.exp %109 : vector<16x128xf32>
    %cst_58 = arith.constant 1.000000e+00 : f32
    %111 = vector.broadcast %cst_58 : f32 to vector<16x128xf32>
    %112 = arith.addf %111, %110 : vector<16x128xf32>
    %113 = arith.divf %111, %112 : vector<16x128xf32>
    %c0_59 = arith.constant 0 : index
    %c0_60 = arith.constant 0 : index
    %114 = vector.load %arg5[%c0_59, %c0_60] : memref<16x128xf32, #tpu.memory_space<vmem>>, vector<16x128xf32>
    tpu.vector_store %arg5[%c0_59, %c0_60], %113 {strides = array<i32>} : memref<16x128xf32, #tpu.memory_space<vmem>>, vector<16x128xf32>,
    return
  }
  func.func @transform_0(%arg0: i32, %arg1: i32) -> (i32, i32, i32) {
    %c0_i32 = arith.constant 0 : i32
    %c0_i32_0 = arith.constant 0 : i32
    %c0_i32_1 = arith.constant 0 : i32
    return %c0_i32, %arg0, %c0_i32_0 : i32, i32, i32
  }
  func.func @transform_1(%arg0: i32, %arg1: i32) -> (i32, i32, i32) {
    %c0_i32 = arith.constant 0 : i32
    %c0_i32_0 = arith.constant 0 : i32
    %c0_i32_1 = arith.constant 0 : i32
    return %c0_i32, %arg1, %c0_i32_0 : i32, i32, i32
  }
  func.func @transform_2(%arg0: i32, %arg1: i32) -> (i32, i32) {
    %c0_i32 = arith.constant 0 : i32
    %c0_i32_0 = arith.constant 0 : i32
    %c0_i32_1 = arith.constant 0 : i32
    return %c0_i32, %c0_i32_0 : i32, i32
  }
  func.func @transform_3(%arg0: i32, %arg1: i32) -> (i32, i32) {
    %c0_i32 = arith.constant 0 : i32
    return %arg0, %arg1 : i32, i32
  }
}

</mosaic_0001>

<bundles_post_ra>
// kernel: forward.1
= control target key start
LH: loop header
LB: loop body
LE: loop exit
PB: predicated region body
PF: predicated region fallthrough
CT: control target
= control target key end

     0   :  { %8 = vsyncpa [#allocation5], 0  ;;  %s2916_s12 = smov [#allocation4]   ;;  %s3820_s0 = inlined_call_operand.vmem [shape: bf16[16,16,64], index: 0, kind: input, shape index: {}]   ;;  %s3821_s1 = inlined_call_operand.hbm [shape: bf16[16,128,64], index: 1, kind: input, shape index: {}]   ;;  %s3822_s2 = inlined_call_operand.vmem [shape: f32[16,128], index: 2, kind: input, shape index: {}]   ;;  %s3823_s3 = inlined_call_operand.vmem [shape: f32[16,128], index: 3, kind: output, shape index: {}]  }
   0x1   :  { %s16_s13 = sshll.u32 %s2916_s12, 4  ;;  %s2884_s16 = scalar_lea.hbm %s3821_s1, 16384  ;;  %s17_s13 = int_to_ptr.vmem [resolvable:$true] %s16_s13 }
   0x2   :  { %p2885_p0 = scmp.ne.s32.totalorder %s3821_s1, %s2884_s16  ;;  %p2888_p1 = scmp.lt.u32.totalorder %s2884_s16, %s3821_s1 }
   0x4   :  { %p2890_p2 = pnand %p2888_p1, %p2885_p0 }
   0x6   :  { %2893 = shalt.err (!%p2890_p2)
}
   0x7   :  { %s2894_s21 = scalar_lea.vmem %s17_s13, 16384  ;;  %p2899_p4 = scmp.lt.s32.totalorder %s17_s13, %s17_s13 }
   0x8   :  { %p2895_p3 = scmp.ne.s32.totalorder %s17_s13, %s2894_s21  ;;  %p2900_p5 = scmp.lt.s32.totalorder %s2894_s21, %s2894_s21 }
   0xa   :  { %p2901_p6 = por %p2900_p5, %p2899_p4 }
   0xc   :  { %p2902_p7 = pnand %p2901_p6, %p2895_p3 }
   0xe   :  { %2905 = shalt.err (!%p2902_p7)
}
   0xf   :  { %s2917_s22 = smov 64   ;;  %s2918_s23 = smov 4  }
  0x10   :  { %22 = dma.hbm_to_vmem [thread:$0]  %s3821_s1, 16384, %s17_s13, [#allocation5], %s2917_s22, %s2917_s22, %s2918_s23  }
  0x11   :  { %2910 = dma.done.wait [#allocation5], 16384  }
  0x12   :  { %2911 = vsyncadd [#allocation5], 4294950912  ;;  %vm365_vm0 = vcmask 523264   ;;  %v2796_v0 = vld [vmem:[#allocation4 + $0x40] sm:$0xff]   ;;  %v2800_v5 = vld [vmem:[#allocation4 + $0x48] sm:$0xff]   ;;  %s3393_s9 = smov 1  }
  0x13   :  { %v2797_v1 = vld [vmem:[#allocation4 + $0xc0] sm:$0xff]   ;;  %2753 = vmatprep.subr.msk.bf16.mxu0 %vm365_vm0, %v2796_v0  ;;  %v2801_v7 = vld [vmem:[#allocation4 + $0xc8] sm:$0xff]   ;;  %v2804_v11 = vld [vmem:[#allocation4 + $0x50] sm:$0xff]  }
  0x14   :  { %v2798_v2 = vld [vmem:[#allocation4] sm:$0xff]   ;;  %2761 = vmatprep.subr.msk.bf16.mxu1 %vm365_vm0, %v2797_v1  ;;  %v2802_v8 = vld [vmem:[#allocation4 + $0x8] sm:$0xff]   ;;  %v2805_v13 = vld [vmem:[#allocation4 + $0xd0] sm:$0xff]  }
  0x15   :  { %v2799_v3 = vld [vmem:[#allocation4 + $0x80] sm:$0xff]   ;;  %v415_v4 = vsel %vm365_vm0, %v2798_v2, 0  ;;  %v2803_v9 = vld [vmem:[#allocation4 + $0x88] sm:$0xff]   ;;  %v418_v10 = vsel %vm365_vm0, %v2802_v8, 0  ;;  %v2806_v14 = vld [vmem:[#allocation4 + $0x10] sm:$0xff]  }
  0x16   :  { %2562 = vmatpush3.bf16.xpose.msra.mxu0 %v415_v4  ;;  %v463_v6 = vsel %vm365_vm0, %v2799_v3, 0  ;;  %v466_v12 = vsel %vm365_vm0, %v2803_v9, 0  ;;  %v2807_v15 = vld [vmem:[#allocation4 + $0x90] sm:$0xff]   ;;  %v421_v16 = vsel %vm365_vm0, %v2806_v14, 0  ;;  %v2808_v17 = vld [vmem:[#allocation4 + $0x58] sm:$0xff]   ;;  %v2812_v23 = vld [vmem:[#allocation4 + $0x60] sm:$0xff]  }
  0x17   :  { %2610 = vmatpush3.bf16.xpose.msra.mxu1 %v463_v6  ;;  %2754 = vmatprep.subr.msk.bf16.mxu0 %vm365_vm0, %v2800_v5  ;;  %v469_v18 = vsel %vm365_vm0, %v2807_v15, 0  ;;  %v2809_v19 = vld [vmem:[#allocation4 + $0xd8] sm:$0xff]   ;;  %v2813_v25 = vld [vmem:[#allocation4 + $0xe0] sm:$0xff]   ;;  %v2972_v28 = vld [vmem:[%s3820_s0] sm:$0xff]  }
  0x18   :  { %2762 = vmatprep.subr.msk.bf16.mxu1 %vm365_vm0, %v2801_v7  ;;  %v2810_v20 = vld [vmem:[#allocation4 + $0x18] sm:$0xff]   ;;  %v2814_v26 = vld [vmem:[#allocation4 + $0x20] sm:$0xff]   ;;  %v2816_v30 = vld [vmem:[#allocation4 + $0x68] sm:$0xff]   ;;  %2577 = vmatprep.mubr.msk.bf16.mxu0 %vm365_vm0, %v2972_v28 }
  0x19   :  { %v2811_v21 = vld [vmem:[#allocation4 + $0x98] sm:$0xff]   ;;  %v424_v22 = vsel %vm365_vm0, %v2810_v20, 0  ;;  %v2815_v27 = vld [vmem:[#allocation4 + $0xa0] sm:$0xff]   ;;  %v427_v29 = vsel %vm365_vm0, %v2814_v26, 0  ;;  %2625 = vmatprep.mubr.msk.bf16.mxu1 %vm365_vm0, %v2972_v28  ;;  %v2817_v32 = vld [vmem:[#allocation4 + $0xe8] sm:$0xff]  }
  0x1a   :  { %v472_v24 = vsel %vm365_vm0, %v2811_v21, 0  ;;  %v475_v31 = vsel %vm365_vm0, %v2815_v27, 0  ;;  %v2818_v33 = vld [vmem:[#allocation4 + $0x28] sm:$0xff]   ;;  %v2820_v36 = vld [vmem:[#allocation4 + $0x70] sm:$0xff]   ;;  %v2824_v42 = vld [vmem:[#allocation4 + $0x78] sm:$0xff]  }
  0x1b   :  { %v2819_v34 = vld [vmem:[#allocation4 + $0xa8] sm:$0xff]   ;;  %v430_v35 = vsel %vm365_vm0, %v2818_v33, 0  ;;  %v2821_v38 = vld [vmem:[#allocation4 + $0xf0] sm:$0xff]   ;;  %v2825_v44 = vld [vmem:[#allocation4 + $0xf8] sm:$0xff]  }
  0x1c   :  { %v478_v37 = vsel %vm365_vm0, %v2819_v34, 0  ;;  %v2822_v39 = vld [vmem:[#allocation4 + $0x30] sm:$0xff]   ;;  %v2826_v45 = vld [vmem:[#allocation4 + $0x38] sm:$0xff]   ;;  %v3008_v50 = vld [vmem:[%s3820_s0 + $0x10] sm:$0xff]  }
  0x1d   :  { %v2823_v40 = vld [vmem:[#allocation4 + $0xb0] sm:$0xff]   ;;  %v433_v41 = vsel %vm365_vm0, %v2822_v39, 0  ;;  %v2827_v46 = vld [vmem:[#allocation4 + $0xb8] sm:$0xff]   ;;  %v436_v47 = vsel %vm365_vm0, %v2826_v45, 0  ;;  %v3021_v51 = vld [vmem:[%s3820_s0 + $0x18] sm:$0xff]  }
  0x1e   :  { %2564 = vmatpush3.bf16.xpose.msra.mxu0 %v418_v10  ;;  %v481_v43 = vsel %vm365_vm0, %v2823_v40, 0  ;;  %v484_v48 = vsel %vm365_vm0, %v2827_v46, 0  ;;  %v2995_v49 = vld [vmem:[%s3820_s0 + $0x8] sm:$0xff]   ;;  %v3034_v52 = vld [vmem:[%s3820_s0 + $0x20] sm:$0xff]   ;;  %v3060_v54 = vld [vmem:[%s3820_s0 + $0x30] sm:$0xff]  }
  0x1f   :  { %2612 = vmatpush3.bf16.xpose.msra.mxu1 %v466_v12  ;;  %2755 = vmatprep.subr.msk.bf16.mxu0 %vm365_vm0, %v2804_v11  ;;  %v3047_v53 = vld [vmem:[%s3820_s0 + $0x28] sm:$0xff]   ;;  %v3073_v55 = vld [vmem:[%s3820_s0 + $0x38] sm:$0xff]   ;;  %v3086_v56 = vld [vmem:[%s3820_s0 + $0x40] sm:$0xff]  }
  0x20   :  { %2763 = vmatprep.subr.msk.bf16.mxu1 %vm365_vm0, %v2805_v13  ;;  %v3099_v57 = vld [vmem:[%s3820_s0 + $0x48] sm:$0xff]   ;;  %v3112_v58 = vld [vmem:[%s3820_s0 + $0x50] sm:$0xff]   ;;  %v3125_v59 = vld [vmem:[%s3820_s0 + $0x58] sm:$0xff]  }
  0x21   :  { %v3138_v60 = vld [vmem:[%s3820_s0 + $0x60] sm:$0xff]   ;;  %v3151_v61 = vld [vmem:[%s3820_s0 + $0x68] sm:$0xff]   ;;  %v3164_v62 = vld [vmem:[%s3820_s0 + $0x70] sm:$0xff]  }
  0x22   :  { %v3177_v63 = vld [vmem:[%s3820_s0 + $0x78] sm:$0xff]  }
  0x26   :  { %2566 = vmatpush3.bf16.xpose.msra.mxu0 %v421_v16 }
  0x27   :  { %2614 = vmatpush3.bf16.xpose.msra.mxu1 %v469_v18  ;;  %2756 = vmatprep.subr.msk.bf16.mxu0 %vm365_vm0, %v2808_v17 }
  0x28   :  { %2764 = vmatprep.subr.msk.bf16.mxu1 %vm365_vm0, %v2809_v19 }
  0x2e   :  { %2568 = vmatpush3.bf16.xpose.msra.mxu0 %v424_v22 }
  0x2f   :  { %2616 = vmatpush3.bf16.xpose.msra.mxu1 %v472_v24  ;;  %2757 = vmatprep.subr.msk.bf16.mxu0 %vm365_vm0, %v2812_v23 }
  0x30   :  { %2765 = vmatprep.subr.msk.bf16.mxu1 %vm365_vm0, %v2813_v25 }
  0x36   :  { %2570 = vmatpush3.bf16.xpose.msra.mxu0 %v427_v29 }
  0x37   :  { %2618 = vmatpush3.bf16.xpose.msra.mxu1 %v475_v31  ;;  %2758 = vmatprep.subr.msk.bf16.mxu0 %vm365_vm0, %v2816_v30 }
  0x38   :  { %2766 = vmatprep.subr.msk.bf16.mxu1 %vm365_vm0, %v2817_v32 }
  0x3e   :  { %2572 = vmatpush3.bf16.xpose.msra.mxu0 %v430_v35 }
  0x3f   :  { %2620 = vmatpush3.bf16.xpose.msra.mxu1 %v478_v37  ;;  %2759 = vmatprep.subr.msk.bf16.mxu0 %vm365_vm0, %v2820_v36 }
  0x40   :  { %2767 = vmatprep.subr.msk.bf16.mxu1 %vm365_vm0, %v2821_v38 }
  0x46   :  { %2574 = vmatpush3.bf16.xpose.msra.mxu0 %v433_v41 }
  0x47   :  { %2622 = vmatpush3.bf16.xpose.msra.mxu1 %v481_v43  ;;  %2760 = vmatprep.subr.msk.bf16.mxu0 %vm365_vm0, %v2824_v42 }
  0x48   :  { %2768 = vmatprep.subr.msk.bf16.mxu1 %vm365_vm0, %v2825_v44 }
  0x4e   :  { %2576 = vmatpush3.bf16.xpose.msra.mxu0 %v436_v47 }
  0x4f   :  { %2624 = vmatpush3.bf16.xpose.msra.mxu1 %v484_v48 }
  0x55   :  { %2578 = vmatmul.mubr.msk.bf16.vlgmr.msra.gmra.mrb[0].mxu0 %vm365_vm0, %v2972_v28 }
  0x56   :  { %2626 = vmatmul.mubr.msk.bf16.vlgmr.msra.gmra.mrb[0].mxu1 %vm365_vm0, %v2972_v28  ;;  %2579 = vmatprep.mubr.msk.bf16.mxu0 %vm365_vm0, %v2995_v49 }
  0x57   :  { %2627 = vmatprep.mubr.msk.bf16.mxu1 %vm365_vm0, %v2995_v49 }
  0x5d   :  { %2580 = vmatmul.mubr.msk.bf16.gmra.mrb[4].mxu0 %vm365_vm0, %v2995_v49 }
  0x5e   :  { %2628 = vmatmul.mubr.msk.bf16.gmra.mrb[4].mxu1 %vm365_vm0, %v2995_v49  ;;  %2581 = vmatprep.mubr.msk.bf16.mxu0 %vm365_vm0, %v3008_v50 }
  0x5f   :  { %2629 = vmatprep.mubr.msk.bf16.mxu1 %vm365_vm0, %v3008_v50 }
  0x65   :  { %2582 = vmatmul.mubr.msk.bf16.gmra.mrb[8].mxu0 %vm365_vm0, %v3008_v50 }
  0x66   :  { %2630 = vmatmul.mubr.msk.bf16.gmra.mrb[8].mxu1 %vm365_vm0, %v3008_v50  ;;  %2583 = vmatprep.mubr.msk.bf16.mxu0 %vm365_vm0, %v3021_v51 }
  0x67   :  { %2631 = vmatprep.mubr.msk.bf16.mxu1 %vm365_vm0, %v3021_v51 }
  0x6d   :  { %2584 = vmatmul.mubr.msk.bf16.gmra.mrb[12].mxu0 %vm365_vm0, %v3021_v51 }
  0x6e   :  { %2632 = vmatmul.mubr.msk.bf16.gmra.mrb[12].mxu1 %vm365_vm0, %v3021_v51  ;;  %2585 = vmatprep.mubr.msk.bf16.mxu0 %vm365_vm0, %v3034_v52 }
  0x6f   :  { %2633 = vmatprep.mubr.msk.bf16.mxu1 %vm365_vm0, %v3034_v52 }
  0x75   :  { %2586 = vmatmul.mubr.msk.bf16.gmra.mrb[16].mxu0 %vm365_vm0, %v3034_v52 }
  0x76   :  { %2634 = vmatmul.mubr.msk.bf16.gmra.mrb[16].mxu1 %vm365_vm0, %v3034_v52  ;;  %2587 = vmatprep.mubr.msk.bf16.mxu0 %vm365_vm0, %v3047_v53 }
  0x77   :  { %2635 = vmatprep.mubr.msk.bf16.mxu1 %vm365_vm0, %v3047_v53 }
  0x7d   :  { %2588 = vmatmul.mubr.msk.bf16.gmra.mrb[20].mxu0 %vm365_vm0, %v3047_v53 }
  0x7e   :  { %2636 = vmatmul.mubr.msk.bf16.gmra.mrb[20].mxu1 %vm365_vm0, %v3047_v53  ;;  %2589 = vmatprep.mubr.msk.bf16.mxu0 %vm365_vm0, %v3060_v54 }
  0x7f   :  { %2637 = vmatprep.mubr.msk.bf16.mxu1 %vm365_vm0, %v3060_v54 }
  0x85   :  { %2590 = vmatmul.mubr.msk.bf16.gmra.mrb[24].mxu0 %vm365_vm0, %v3060_v54 }
  0x86   :  { %2638 = vmatmul.mubr.msk.bf16.gmra.mrb[24].mxu1 %vm365_vm0, %v3060_v54  ;;  %2591 = vmatprep.mubr.msk.bf16.mxu0 %vm365_vm0, %v3073_v55 }
  0x87   :  { %2639 = vmatprep.mubr.msk.bf16.mxu1 %vm365_vm0, %v3073_v55 }
  0x8d   :  { %2592 = vmatmul.mubr.msk.bf16.gmra.mrb[28].mxu0 %vm365_vm0, %v3073_v55 }
  0x8e   :  { %2640 = vmatmul.mubr.msk.bf16.gmra.mrb[28].mxu1 %vm365_vm0, %v3073_v55  ;;  %2593 = vmatprep.mubr.msk.bf16.mxu0 %vm365_vm0, %v3086_v56 }
  0x8f   :  { %2641 = vmatprep.mubr.msk.bf16.mxu1 %vm365_vm0, %v3086_v56 }
  0x95   :  { %2594 = vmatmul.mubr.msk.bf16.gmra.mrb[32].mxu0 %vm365_vm0, %v3086_v56 }
  0x96   :  { %2642 = vmatmul.mubr.msk.bf16.gmra.mrb[32].mxu1 %vm365_vm0, %v3086_v56  ;;  %2595 = vmatprep.mubr.msk.bf16.mxu0 %vm365_vm0, %v3099_v57 }
  0x97   :  { %2643 = vmatprep.mubr.msk.bf16.mxu1 %vm365_vm0, %v3099_v57 }
  0x9d   :  { %2596 = vmatmul.mubr.msk.bf16.gmra.mrb[36].mxu0 %vm365_vm0, %v3099_v57 }
  0x9e   :  { %2644 = vmatmul.mubr.msk.bf16.gmra.mrb[36].mxu1 %vm365_vm0, %v3099_v57  ;;  %2597 = vmatprep.mubr.msk.bf16.mxu0 %vm365_vm0, %v3112_v58 }
  0x9f   :  { %2645 = vmatprep.mubr.msk.bf16.mxu1 %vm365_vm0, %v3112_v58 }
  0xa5   :  { %2598 = vmatmul.mubr.msk.bf16.gmra.mrb[40].mxu0 %vm365_vm0, %v3112_v58 }
  0xa6   :  { %2646 = vmatmul.mubr.msk.bf16.gmra.mrb[40].mxu1 %vm365_vm0, %v3112_v58  ;;  %2599 = vmatprep.mubr.msk.bf16.mxu0 %vm365_vm0, %v3125_v59 }
  0xa7   :  { %2647 = vmatprep.mubr.msk.bf16.mxu1 %vm365_vm0, %v3125_v59 }
  0xad   :  { %2600 = vmatmul.mubr.msk.bf16.gmra.mrb[44].mxu0 %vm365_vm0, %v3125_v59 }
  0xae   :  { %2648 = vmatmul.mubr.msk.bf16.gmra.mrb[44].mxu1 %vm365_vm0, %v3125_v59  ;;  %2601 = vmatprep.mubr.msk.bf16.mxu0 %vm365_vm0, %v3138_v60 }
  0xaf   :  { %2649 = vmatprep.mubr.msk.bf16.mxu1 %vm365_vm0, %v3138_v60 }
  0xb5   :  { %2602 = vmatmul.mubr.msk.bf16.gmra.mrb[48].mxu0 %vm365_vm0, %v3138_v60 }
  0xb6   :  { %2650 = vmatmul.mubr.msk.bf16.gmra.mrb[48].mxu1 %vm365_vm0, %v3138_v60  ;;  %2603 = vmatprep.mubr.msk.bf16.mxu0 %vm365_vm0, %v3151_v61 }
  0xb7   :  { %2651 = vmatprep.mubr.msk.bf16.mxu1 %vm365_vm0, %v3151_v61 }
  0xbd   :  { %2604 = vmatmul.mubr.msk.bf16.gmra.mrb[52].mxu0 %vm365_vm0, %v3151_v61 }
  0xbe   :  { %2652 = vmatmul.mubr.msk.bf16.gmra.mrb[52].mxu1 %vm365_vm0, %v3151_v61  ;;  %2605 = vmatprep.mubr.msk.bf16.mxu0 %vm365_vm0, %v3164_v62 }
  0xbf   :  { %2653 = vmatprep.mubr.msk.bf16.mxu1 %vm365_vm0, %v3164_v62 }
  0xc5   :  { %2606 = vmatmul.mubr.msk.bf16.gmra.mrb[56].mxu0 %vm365_vm0, %v3164_v62 }
  0xc6   :  { %2654 = vmatmul.mubr.msk.bf16.gmra.mrb[56].mxu1 %vm365_vm0, %v3164_v62  ;;  %2607 = vmatprep.mubr.msk.bf16.mxu0 %vm365_vm0, %v3177_v63 }
  0xc7   :  { %2655 = vmatprep.mubr.msk.bf16.mxu1 %vm365_vm0, %v3177_v63 }
  0xcd   :  { %2608 = vmatmul.mubr.msk.bf16.gmra.mrb[60].mxu0 %vm365_vm0, %v3177_v63 }
  0xce   :  { %2656 = vmatmul.mubr.msk.bf16.gmra.mrb[60].mxu1 %vm365_vm0, %v3177_v63 }
 0x128   :  { %v3191_v0 = vpop.f32.mrb[0].mxu0 }
 0x129   :  { %v3193_v1 = vpop.f32.mrb[0].mxu1  ;;  %v3195_v2 = vpop.f32.mrb[1].mxu0 }
 0x12a   :  { %v933_v3 = vmax.f32 %v3191_v0, %v3195_v2  ;;  %v3199_v4 = vpop.f32.mrb[1].mxu1  ;;  %v3201_v5 = vpop.f32.mrb[2].mxu0 }
 0x12b   :  { %v3203_v6 = vpop.f32.mrb[2].mxu1  ;;  %v3205_v7 = vpop.f32.mrb[3].mxu0 }
 0x12c   :  { %v1004_v8 = vmax.f32 %v933_v3, %v3193_v1  ;;  %v934_v9 = vmax.f32 %v3201_v5, %v3205_v7  ;;  %v3210_v10 = vpop.f32.mrb[3].mxu1 }
 0x12e   :  { %v1075_v11 = vmax.f32 %v1004_v8, %v3199_v4  ;;  %v1005_v12 = vmax.f32 %v934_v9, %v3203_v6 }
 0x130   :  { %1146 = vst [vmem:[#allocation2] sm:$0xff] %v1075_v11  ;;  %v1076_v13 = vmax.f32 %v1005_v12, %v3210_v10  ;;  %v3215_v14 = vpop.f32.mrb[4].mxu0 }
 0x131   :  { %v3217_v15 = vpop.f32.mrb[4].mxu1  ;;  %v3219_v16 = vpop.f32.mrb[5].mxu0 }
 0x132   :  { %1147 = vst [vmem:[#allocation2 + $0x8] sm:$0xff] %v1076_v13  ;;  %v935_v17 = vmax.f32 %v3215_v14, %v3219_v16  ;;  %v3223_v18 = vpop.f32.mrb[5].mxu1  ;;  %v3225_v19 = vpop.f32.mrb[6].mxu0 }
 0x133   :  { %v3227_v20 = vpop.f32.mrb[6].mxu1  ;;  %v3229_v21 = vpop.f32.mrb[7].mxu0 }
 0x134   :  { %v1006_v22 = vmax.f32 %v935_v17, %v3217_v15  ;;  %v936_v23 = vmax.f32 %v3225_v19, %v3229_v21  ;;  %v3234_v24 = vpop.f32.mrb[7].mxu1 }
 0x136   :  { %v1077_v25 = vmax.f32 %v1006_v22, %v3223_v18  ;;  %v1007_v26 = vmax.f32 %v936_v23, %v3227_v20 }
 0x138   :  { %1148 = vst [vmem:[#allocation2 + $0x10] sm:$0xff] %v1077_v25  ;;  %v1078_v27 = vmax.f32 %v1007_v26, %v3234_v24  ;;  %v564_v29 = vpop.f32.mrb[8].mxu0 }
 0x139   :  { %v896_v30 = vmax.f32 %v3191_v0, %v564_v29  ;;  %v757_v31 = vpop.f32.mrb[8].mxu1  ;;  %v566_v32 = vpop.f32.mrb[9].mxu0 }
 0x13a   :  { %1149 = vst [vmem:[#allocation2 + $0x18] sm:$0xff] %v1078_v27  ;;  %v1036_v33 = vmax.f32 %v3193_v1, %v757_v31  ;;  %v937_v34 = vmax.f32 %v564_v29, %v566_v32  ;;  %v965_v35 = vmax.f32 %v3195_v2, %v566_v32  ;;  %v759_v36 = vpop.f32.mrb[9].mxu1  ;;  %v568_v37 = vpop.f32.mrb[10].mxu0 }
 0x13b   :  { %v1107_v38 = vmax.f32 %v3199_v4, %v759_v36  ;;  %v911_v39 = vmax.f32 %v3201_v5, %v568_v37  ;;  %v761_v40 = vpop.f32.mrb[10].mxu1  ;;  %v570_v41 = vpop.f32.mrb[11].mxu0 }
 0x13c   :  { %v1008_v42 = vmax.f32 %v937_v34, %v757_v31  ;;  %v1051_v43 = vmax.f32 %v3203_v6, %v761_v40  ;;  %v938_v44 = vmax.f32 %v568_v37, %v570_v41  ;;  %v980_v45 = vmax.f32 %v3205_v7, %v570_v41  ;;  %v763_v46 = vpop.f32.mrb[11].mxu1 }
 0x13d   :  { %v1122_v47 = vmax.f32 %v3210_v10, %v763_v46 }
 0x13e   :  { %v1079_v48 = vmax.f32 %v1008_v42, %v759_v36  ;;  %v1009_v0 = vmax.f32 %v938_v44, %v761_v40 }
 0x140   :  { %1150 = vst [vmem:[#allocation2 + $0x20] sm:$0xff] %v1079_v48  ;;  %v1080_v1 = vmax.f32 %v1009_v0, %v763_v46  ;;  %v574_v2 = vpop.f32.mrb[12].mxu0 }
 0x141   :  { %v897_v3 = vmax.f32 %v3215_v14, %v574_v2  ;;  %v767_v4 = vpop.f32.mrb[12].mxu1  ;;  %v576_v5 = vpop.f32.mrb[13].mxu0 }
 0x142   :  { %1151 = vst [vmem:[#allocation2 + $0x28] sm:$0xff] %v1080_v1  ;;  %v1037_v8 = vmax.f32 %v3217_v15, %v767_v4  ;;  %v939_v9 = vmax.f32 %v574_v2, %v576_v5  ;;  %v966_v6 = vmax.f32 %v3219_v16, %v576_v5  ;;  %v769_v11 = vpop.f32.mrb[13].mxu1  ;;  %v578_v7 = vpop.f32.mrb[14].mxu0 }
 0x143   :  { %v1108_v12 = vmax.f32 %v3223_v18, %v769_v11  ;;  %v912_v10 = vmax.f32 %v3225_v19, %v578_v7  ;;  %v771_v13 = vpop.f32.mrb[14].mxu1  ;;  %v580_v17 = vpop.f32.mrb[15].mxu0 }
 0x144   :  { %v1010_v22 = vmax.f32 %v939_v9, %v767_v4  ;;  %v1052_v23 = vmax.f32 %v3227_v20, %v771_v13  ;;  %v940_v14 = vmax.f32 %v578_v7, %v580_v17  ;;  %v981_v25 = vmax.f32 %v3229_v21, %v580_v17  ;;  %v773_v26 = vpop.f32.mrb[15].mxu1 }
 0x145   :  { %v1123_v15 = vmax.f32 %v3234_v24, %v773_v26 }
 0x146   :  { %v1081_v27 = vmax.f32 %v1010_v22, %v769_v11  ;;  %v1011_v29 = vmax.f32 %v940_v14, %v771_v13 }
 0x148   :  { %1152 = vst [vmem:[#allocation2 + $0x30] sm:$0xff] %v1081_v27  ;;  %v1082_v16 = vmax.f32 %v1011_v29, %v773_v26  ;;  %v584_v31 = vpop.f32.mrb[16].mxu0 }
 0x149   :  { %v3255_v32 = vmax.f32 %v896_v30, %v584_v31  ;;  %v777_v18 = vpop.f32.mrb[16].mxu1  ;;  %v586_v19 = vpop.f32.mrb[17].mxu0 }
 0x14a   :  { %1153 = vst [vmem:[#allocation2 + $0x38] sm:$0xff] %v1082_v16  ;;  %v3257_v34 = vmax.f32 %v1036_v33, %v777_v18  ;;  %v941_v36 = vmax.f32 %v584_v31, %v586_v19  ;;  %v3259_v20 = vmax.f32 %v965_v35, %v586_v19  ;;  %v779_v37 = vpop.f32.mrb[17].mxu1  ;;  %v588_v21 = vpop.f32.mrb[18].mxu0 }
 0x14b   :  { %v3261_v40 = vmax.f32 %v1107_v38, %v779_v37  ;;  %v3263_v24 = vmax.f32 %v911_v39, %v588_v21  ;;  %v781_v41 = vpop.f32.mrb[18].mxu1  ;;  %v590_v42 = vpop.f32.mrb[19].mxu0 }
 0x14c   :  { %v1012_v44 = vmax.f32 %v941_v36, %v777_v18  ;;  %v3265_v46 = vmax.f32 %v1051_v43, %v781_v41  ;;  %v942_v30 = vmax.f32 %v588_v21, %v590_v42  ;;  %v3267_v48 = vmax.f32 %v980_v45, %v590_v42  ;;  %v783_v0 = vpop.f32.mrb[19].mxu1 }
 0x14d   :  { %v3269_v33 = vmax.f32 %v1122_v47, %v783_v0 }
 0x14e   :  { %v1083_v1 = vmax.f32 %v1012_v44, %v779_v37  ;;  %v1013_v35 = vmax.f32 %v942_v30, %v781_v41 }
 0x150   :  { %1154 = vst [vmem:[#allocation2 + $0x40] sm:$0xff] %v1083_v1  ;;  %v1084_v2 = vmax.f32 %v1013_v35, %v783_v0  ;;  %v594_v4 = vpop.f32.mrb[20].mxu0 }
 0x151   :  { %v3271_v38 = vmax.f32 %v897_v3, %v594_v4  ;;  %v787_v39 = vpop.f32.mrb[20].mxu1  ;;  %v596_v5 = vpop.f32.mrb[21].mxu0 }
 0x152   :  { %1155 = vst [vmem:[#allocation2 + $0x48] sm:$0xff] %v1084_v2  ;;  %v3273_v9 = vmax.f32 %v1037_v8, %v787_v39  ;;  %v943_v43 = vmax.f32 %v594_v4, %v596_v5  ;;  %v3275_v11 = vmax.f32 %v966_v6, %v596_v5  ;;  %v789_v45 = vpop.f32.mrb[21].mxu1  ;;  %v598_v7 = vpop.f32.mrb[22].mxu0 }
 0x153   :  { %v3277_v13 = vmax.f32 %v1108_v12, %v789_v45  ;;  %v3279_v47 = vmax.f32 %v912_v10, %v598_v7  ;;  %v791_v17 = vpop.f32.mrb[22].mxu1  ;;  %v600_v22 = vpop.f32.mrb[23].mxu0 }
 0x154   :  { %v1014_v14 = vmax.f32 %v943_v43, %v787_v39  ;;  %v3281_v26 = vmax.f32 %v1052_v23, %v791_v17  ;;  %v944_v3 = vmax.f32 %v598_v7, %v600_v22  ;;  %v3283_v27 = vmax.f32 %v981_v25, %v600_v22  ;;  %v793_v29 = vpop.f32.mrb[23].mxu1 }
 0x155   :  { %v3285_v8 = vmax.f32 %v1123_v15, %v793_v29 }
 0x156   :  { %v1085_v16 = vmax.f32 %v1014_v14, %v789_v45  ;;  %v1015_v6 = vmax.f32 %v944_v3, %v791_v17 }
 0x158   :  { %1156 = vst [vmem:[#allocation2 + $0x50] sm:$0xff] %v1085_v16  ;;  %v1086_v31 = vmax.f32 %v1015_v6, %v793_v29  ;;  %v604_v18 = vpop.f32.mrb[24].mxu0 }
 0x159   :  { %v900_v12 = vmax.f32 %v3255_v32, %v604_v18  ;;  %v797_v10 = vpop.f32.mrb[24].mxu1  ;;  %v606_v19 = vpop.f32.mrb[25].mxu0 }
 0x15a   :  { %1157 = vst [vmem:[#allocation2 + $0x58] sm:$0xff] %v1086_v31  ;;  %v1040_v36 = vmax.f32 %v3257_v34, %v797_v10  ;;  %v945_v23 = vmax.f32 %v604_v18, %v606_v19  ;;  %v969_v37 = vmax.f32 %v3259_v20, %v606_v19  ;;  %v799_v25 = vpop.f32.mrb[25].mxu1  ;;  %v608_v21 = vpop.f32.mrb[26].mxu0 }
 0x15b   :  { %v1111_v15 = vmax.f32 %v3261_v40, %v799_v25  ;;  %v915_v41 = vmax.f32 %v3263_v24, %v608_v21  ;;  %v801_v42 = vpop.f32.mrb[26].mxu1  ;;  %v610_v44 = vpop.f32.mrb[27].mxu0 }
 0x15c   :  { %v1016_v30 = vmax.f32 %v945_v23, %v797_v10  ;;  %v1055_v0 = vmax.f32 %v3265_v46, %v801_v42  ;;  %v946_v32 = vmax.f32 %v608_v21, %v610_v44  ;;  %v984_v1 = vmax.f32 %v3267_v48, %v610_v44  ;;  %v803_v35 = vpop.f32.mrb[27].mxu1 }
 0x15d   :  { %v1126_v34 = vmax.f32 %v3269_v33, %v803_v35 }
 0x15e   :  { %v1087_v2 = vmax.f32 %v1016_v30, %v799_v25  ;;  %v1017_v4 = vmax.f32 %v946_v32, %v801_v42 }
 0x160   :  { %1158 = vst [vmem:[#allocation2 + $0x60] sm:$0xff] %v1087_v2  ;;  %v1088_v20 = vmax.f32 %v1017_v4, %v803_v35  ;;  %v614_v39 = vpop.f32.mrb[28].mxu0 }
 0x161   :  { %v901_v40 = vmax.f32 %v3271_v38, %v614_v39  ;;  %v807_v5 = vpop.f32.mrb[28].mxu1  ;;  %v616_v24 = vpop.f32.mrb[29].mxu0 }
 0x162   :  { %1159 = vst [vmem:[#allocation2 + $0x68] sm:$0xff] %v1088_v20  ;;  %v1041_v43 = vmax.f32 %v3273_v9, %v807_v5  ;;  %v947_v45 = vmax.f32 %v614_v39, %v616_v24  ;;  %v970_v46 = vmax.f32 %v3275_v11, %v616_v24  ;;  %v809_v7 = vpop.f32.mrb[29].mxu1  ;;  %v618_v48 = vpop.f32.mrb[30].mxu0 }
 0x163   :  { %v1112_v17 = vmax.f32 %v3277_v13, %v809_v7  ;;  %v916_v33 = vmax.f32 %v3279_v47, %v618_v48  ;;  %v811_v22 = vpop.f32.mrb[30].mxu1  ;;  %v620_v14 = vpop.f32.mrb[31].mxu0 }
 0x164   :  { %v1018_v3 = vmax.f32 %v947_v45, %v807_v5  ;;  %v1056_v29 = vmax.f32 %v3281_v26, %v811_v22  ;;  %v948_v38 = vmax.f32 %v618_v48, %v620_v14  ;;  %v985_v16 = vmax.f32 %v3283_v27, %v620_v14  ;;  %v813_v6 = vpop.f32.mrb[31].mxu1 }
 0x165   :  { %v1127_v9 = vmax.f32 %v3285_v8, %v813_v6 }
 0x166   :  { %v1089_v31 = vmax.f32 %v1018_v3, %v809_v7  ;;  %v1019_v18 = vmax.f32 %v948_v38, %v811_v22 }
 0x168   :  { %1160 = vst [vmem:[#allocation2 + $0x70] sm:$0xff] %v1089_v31  ;;  %v1090_v11 = vmax.f32 %v1019_v18, %v813_v6  ;;  %v624_v10 = vpop.f32.mrb[32].mxu0 }
 0x169   :  { %v3303_v19 = vmax.f32 %v900_v12, %v624_v10  ;;  %v817_v13 = vpop.f32.mrb[32].mxu1  ;;  %v626_v47 = vpop.f32.mrb[33].mxu0 }
 0x16a   :  { %1161 = vst [vmem:[#allocation2 + $0x78] sm:$0xff] %v1090_v11  ;;  %v3305_v23 = vmax.f32 %v1040_v36, %v817_v13  ;;  %v949_v25 = vmax.f32 %v624_v10, %v626_v47  ;;  %v3307_v26 = vmax.f32 %v969_v37, %v626_v47  ;;  %v819_v21 = vpop.f32.mrb[33].mxu1  ;;  %v628_v27 = vpop.f32.mrb[34].mxu0 }
 0x16b   :  { %v3309_v42 = vmax.f32 %v1111_v15, %v819_v21  ;;  %v3311_v8 = vmax.f32 %v915_v41, %v628_v27  ;;  %v821_v44 = vpop.f32.mrb[34].mxu1  ;;  %v630_v30 = vpop.f32.mrb[35].mxu0 }
 0x16c   :  { %v1020_v32 = vmax.f32 %v949_v25, %v817_v13  ;;  %v3313_v35 = vmax.f32 %v1055_v0, %v821_v44  ;;  %v950_v12 = vmax.f32 %v628_v27, %v630_v30  ;;  %v3315_v2 = vmax.f32 %v984_v1, %v630_v30  ;;  %v823_v4 = vpop.f32.mrb[35].mxu1 }
 0x16d   :  { %v3317_v36 = vmax.f32 %v1126_v34, %v823_v4 }
 0x16e   :  { %v1091_v20 = vmax.f32 %v1020_v32, %v819_v21  ;;  %v1021_v37 = vmax.f32 %v950_v12, %v821_v44 }
 0x170   :  { %1162 = vst [vmem:[#allocation2 + $0x80] sm:$0xff] %v1091_v20  ;;  %v1092_v39 = vmax.f32 %v1021_v37, %v823_v4  ;;  %v634_v5 = vpop.f32.mrb[36].mxu0 }
 0x171   :  { %v3319_v15 = vmax.f32 %v901_v40, %v634_v5  ;;  %v827_v41 = vpop.f32.mrb[36].mxu1  ;;  %v636_v24 = vpop.f32.mrb[37].mxu0 }
 0x172   :  { %1163 = vst [vmem:[#allocation2 + $0x88] sm:$0xff] %v1092_v39  ;;  %v3321_v45 = vmax.f32 %v1041_v43, %v827_v41  ;;  %v951_v0 = vmax.f32 %v634_v5, %v636_v24  ;;  %v3323_v7 = vmax.f32 %v970_v46, %v636_v24  ;;  %v829_v1 = vpop.f32.mrb[37].mxu1  ;;  %v638_v48 = vpop.f32.mrb[38].mxu0 }
 0x173   :  { %v3325_v22 = vmax.f32 %v1112_v17, %v829_v1  ;;  %v3327_v34 = vmax.f32 %v916_v33, %v638_v48  ;;  %v831_v14 = vpop.f32.mrb[38].mxu1  ;;  %v640_v3 = vpop.f32.mrb[39].mxu0 }
 0x174   :  { %v1022_v38 = vmax.f32 %v951_v0, %v827_v41  ;;  %v3329_v6 = vmax.f32 %v1056_v29, %v831_v14  ;;  %v952_v40 = vmax.f32 %v638_v48, %v640_v3  ;;  %v3331_v31 = vmax.f32 %v985_v16, %v640_v3  ;;  %v833_v18 = vpop.f32.mrb[39].mxu1 }
 0x175   :  { %v3333_v43 = vmax.f32 %v1127_v9, %v833_v18 }
 0x176   :  { %v1093_v11 = vmax.f32 %v1022_v38, %v829_v1  ;;  %v1023_v46 = vmax.f32 %v952_v40, %v831_v14 }
 0x178   :  { %1164 = vst [vmem:[#allocation2 + $0x90] sm:$0xff] %v1093_v11  ;;  %v1094_v10 = vmax.f32 %v1023_v46, %v833_v18  ;;  %v644_v13 = vpop.f32.mrb[40].mxu0 }
 0x179   :  { %v904_v17 = vmax.f32 %v3303_v19, %v644_v13  ;;  %v837_v33 = vpop.f32.mrb[40].mxu1  ;;  %v646_v47 = vpop.f32.mrb[41].mxu0 }
 0x17a   :  { %1165 = vst [vmem:[#allocation2 + $0x98] sm:$0xff] %v1094_v10  ;;  %v1044_v25 = vmax.f32 %v3305_v23, %v837_v33  ;;  %v953_v29 = vmax.f32 %v644_v13, %v646_v47  ;;  %v973_v21 = vmax.f32 %v3307_v26, %v646_v47  ;;  %v839_v16 = vpop.f32.mrb[41].mxu1  ;;  %v648_v27 = vpop.f32.mrb[42].mxu0 }
 0x17b   :  { %v1115_v9 = vmax.f32 %v3309_v42, %v839_v16  ;;  %v919_v44 = vmax.f32 %v3311_v8, %v648_v27  ;;  %v841_v30 = vpop.f32.mrb[42].mxu1  ;;  %v650_v32 = vpop.f32.mrb[43].mxu0 }
 0x17c   :  { %v1024_v12 = vmax.f32 %v953_v29, %v837_v33  ;;  %v1059_v4 = vmax.f32 %v3313_v35, %v841_v30  ;;  %v954_v19 = vmax.f32 %v648_v27, %v650_v32  ;;  %v988_v20 = vmax.f32 %v3315_v2, %v650_v32  ;;  %v843_v37 = vpop.f32.mrb[43].mxu1 }
 0x17d   :  { %v1130_v23 = vmax.f32 %v3317_v36, %v843_v37 }
 0x17e   :  { %v1095_v39 = vmax.f32 %v1024_v12, %v839_v16  ;;  %v1025_v5 = vmax.f32 %v954_v19, %v841_v30 }
 0x180   :  { %1166 = vst [vmem:[#allocation2 + $0xa0] sm:$0xff] %v1095_v39  ;;  %v1096_v26 = vmax.f32 %v1025_v5, %v843_v37  ;;  %v654_v41 = vpop.f32.mrb[44].mxu0 }
 0x181   :  { %v905_v42 = vmax.f32 %v3319_v15, %v654_v41  ;;  %v847_v24 = vpop.f32.mrb[44].mxu1  ;;  %v656_v8 = vpop.f32.mrb[45].mxu0 }
 0x182   :  { %1167 = vst [vmem:[#allocation2 + $0xa8] sm:$0xff] %v1096_v26  ;;  %v1045_v0 = vmax.f32 %v3321_v45, %v847_v24  ;;  %v955_v1 = vmax.f32 %v654_v41, %v656_v8  ;;  %v974_v35 = vmax.f32 %v3323_v7, %v656_v8  ;;  %v849_v48 = vpop.f32.mrb[45].mxu1  ;;  %v658_v2 = vpop.f32.mrb[46].mxu0 }
 0x183   :  { %v1116_v14 = vmax.f32 %v3325_v22, %v849_v48  ;;  %v920_v36 = vmax.f32 %v3327_v34, %v658_v2  ;;  %v851_v3 = vpop.f32.mrb[46].mxu1  ;;  %v660_v38 = vpop.f32.mrb[47].mxu0 }
 0x184   :  { %v1026_v40 = vmax.f32 %v955_v1, %v847_v24  ;;  %v1060_v18 = vmax.f32 %v3329_v6, %v851_v3  ;;  %v956_v15 = vmax.f32 %v658_v2, %v660_v38  ;;  %v989_v11 = vmax.f32 %v3331_v31, %v660_v38  ;;  %v853_v46 = vpop.f32.mrb[47].mxu1 }
 0x185   :  { %v1131_v45 = vmax.f32 %v3333_v43, %v853_v46 }
 0x186   :  { %v1097_v10 = vmax.f32 %v1026_v40, %v849_v48  ;;  %v1027_v13 = vmax.f32 %v956_v15, %v851_v3 }
 0x188   :  { %1168 = vst [vmem:[#allocation2 + $0xb0] sm:$0xff] %v1097_v10  ;;  %v1098_v7 = vmax.f32 %v1027_v13, %v853_v46  ;;  %v664_v33 = vpop.f32.mrb[48].mxu0 }
 0x189   :  { %v3351_v47 = vmax.f32 %v904_v17, %v664_v33  ;;  %v857_v22 = vpop.f32.mrb[48].mxu1  ;;  %v666_v34 = vpop.f32.mrb[49].mxu0 }
 0x18a   :  { %1169 = vst [vmem:[#allocation2 + $0xb8] sm:$0xff] %v1098_v7  ;;  %v3353_v29 = vmax.f32 %v1044_v25, %v857_v22  ;;  %v957_v16 = vmax.f32 %v664_v33, %v666_v34  ;;  %v3355_v6 = vmax.f32 %v973_v21, %v666_v34  ;;  %v859_v27 = vpop.f32.mrb[49].mxu1  ;;  %v668_v31 = vpop.f32.mrb[50].mxu0 }
 0x18b   :  { %v3357_v30 = vmax.f32 %v1115_v9, %v859_v27  ;;  %v3359_v43 = vmax.f32 %v919_v44, %v668_v31  ;;  %v861_v32 = vpop.f32.mrb[50].mxu1  ;;  %v670_v12 = vpop.f32.mrb[51].mxu0 }
 0x18c   :  { %v1028_v19 = vmax.f32 %v957_v16, %v857_v22  ;;  %v3361_v37 = vmax.f32 %v1059_v4, %v861_v32  ;;  %v958_v17 = vmax.f32 %v668_v31, %v670_v12  ;;  %v3363_v39 = vmax.f32 %v988_v20, %v670_v12  ;;  %v863_v5 = vpop.f32.mrb[51].mxu1 }
 0x18d   :  { %v3365_v25 = vmax.f32 %v1130_v23, %v863_v5 }
 0x18e   :  { %v1099_v26 = vmax.f32 %v1028_v19, %v859_v27  ;;  %v1029_v21 = vmax.f32 %v958_v17, %v861_v32 }
 0x190   :  { %1170 = vst [vmem:[#allocation2 + $0xc0] sm:$0xff] %v1099_v26  ;;  %v1100_v41 = vmax.f32 %v1029_v21, %v863_v5  ;;  %v674_v24 = vpop.f32.mrb[52].mxu0 }
 0x191   :  { %v907_v9 = vmax.f32 %v905_v42, %v674_v24  ;;  %v867_v8 = vpop.f32.mrb[52].mxu1  ;;  %v676_v44 = vpop.f32.mrb[53].mxu0 }
 0x192   :  { %1171 = vst [vmem:[#allocation2 + $0xc8] sm:$0xff] %v1100_v41  ;;  %v1047_v1 = vmax.f32 %v1045_v0, %v867_v8  ;;  %v959_v48 = vmax.f32 %v674_v24, %v676_v44  ;;  %v976_v2 = vmax.f32 %v974_v35, %v676_v44  ;;  %v869_v4 = vpop.f32.mrb[53].mxu1  ;;  %v678_v3 = vpop.f32.mrb[54].mxu0 }
 0x193   :  { %v1118_v38 = vmax.f32 %v1116_v14, %v869_v4  ;;  %v922_v20 = vmax.f32 %v920_v36, %v678_v3  ;;  %v871_v40 = vpop.f32.mrb[54].mxu1  ;;  %v680_v15 = vpop.f32.mrb[55].mxu0 }
 0x194   :  { %v1030_v23 = vmax.f32 %v959_v48, %v867_v8  ;;  %v1062_v46 = vmax.f32 %v1060_v18, %v871_v40  ;;  %v960_v10 = vmax.f32 %v678_v3, %v680_v15  ;;  %v3367_v13 = vmax.f32 %v989_v11, %v680_v15  ;;  %v873_v7 = vpop.f32.mrb[55].mxu1 }
 0x195   :  { %v3369_v33 = vmax.f32 %v1131_v45, %v873_v7 }
 0x196   :  { %v1101_v42 = vmax.f32 %v1030_v23, %v869_v4  ;;  %v1031_v22 = vmax.f32 %v960_v10, %v871_v40 }
 0x198   :  { %1172 = vst [vmem:[#allocation2 + $0xd0] sm:$0xff] %v1101_v42  ;;  %v1102_v0 = vmax.f32 %v1031_v22, %v873_v7  ;;  %v684_v34 = vpop.f32.mrb[56].mxu0 }
 0x199   :  { %v908_v35 = vmax.f32 %v3351_v47, %v684_v34  ;;  %v877_v16 = vpop.f32.mrb[56].mxu1  ;;  %v686_v14 = vpop.f32.mrb[57].mxu0 }
 0x19a   :  { %1173 = vst [vmem:[#allocation2 + $0xd8] sm:$0xff] %v1102_v0  ;;  %v1048_v36 = vmax.f32 %v3353_v29, %v877_v16  ;;  %v961_v27 = vmax.f32 %v684_v34, %v686_v14  ;;  %v977_v18 = vmax.f32 %v3355_v6, %v686_v14  ;;  %v879_v11 = vpop.f32.mrb[57].mxu1  ;;  %v688_v31 = vpop.f32.mrb[58].mxu0  ;;  %v2477_v34 = vld [vmem:[%s3822_s2 + $0x1] ss:$0 sm:$0xff] }
 0x19b   :  { %v1119_v45 = vmax.f32 %v3357_v30, %v879_v11  ;;  %v923_v32 = vmax.f32 %v3359_v43, %v688_v31  ;;  %v881_v12 = vpop.f32.mrb[58].mxu1  ;;  %v690_v19 = vpop.f32.mrb[59].mxu0  ;;  %v2476_v43 = vld [vmem:[%s3822_s2] ss:$0 sm:$0xff] }
 0x19c   :  { %v1032_v17 = vmax.f32 %v961_v27, %v877_v16  ;;  %v1063_v5 = vmax.f32 %v3361_v37, %v881_v12  ;;  %v962_v47 = vmax.f32 %v688_v31, %v690_v19  ;;  %v992_v26 = vmax.f32 %v3363_v39, %v690_v19  ;;  %v883_v21 = vpop.f32.mrb[59].mxu1 }
 0x19d   :  { %v1134_v29 = vmax.f32 %v3365_v25, %v883_v21 }
 0x19e   :  { %v1103_v41 = vmax.f32 %v1032_v17, %v879_v11  ;;  %v1033_v24 = vmax.f32 %v962_v47, %v881_v12 }
 0x1a0   :  { %1174 = vst [vmem:[#allocation2 + $0xe0] sm:$0xff] %v1103_v41  ;;  %v1104_v6 = vmax.f32 %v1033_v24, %v883_v21  ;;  %v694_v8 = vpop.f32.mrb[60].mxu0 }
 0x1a1   :  { %v909_v44 = vmax.f32 %v907_v9, %v694_v8  ;;  %v887_v30 = vpop.f32.mrb[60].mxu1  ;;  %v696_v48 = vpop.f32.mrb[61].mxu0 }
 0x1a2   :  { %1175 = vst [vmem:[#allocation2 + $0xe8] sm:$0xff] %v1104_v6  ;;  %v1049_v37 = vmax.f32 %v1047_v1, %v887_v30  ;;  %v963_v4 = vmax.f32 %v694_v8, %v696_v48  ;;  %v978_v3 = vmax.f32 %v976_v2, %v696_v48  ;;  %v889_v39 = vpop.f32.mrb[61].mxu1  ;;  %v698_v40 = vpop.f32.mrb[62].mxu0 }
 0x1a3   :  { %v910_v15 = vmax.f32 %v908_v35, %v909_v44  ;;  %v1120_v25 = vmax.f32 %v1118_v38, %v889_v39  ;;  %v924_v23 = vmax.f32 %v922_v20, %v698_v40  ;;  %v891_v10 = vpop.f32.mrb[62].mxu1  ;;  %v700_v7 = vpop.f32.mrb[63].mxu0  ;;  %v2478_v38 = vld [vmem:[%s3822_s2 + $0x2] ss:$0 sm:$0xff] }
 0x1a4   :  { %v1050_v42 = vmax.f32 %v1048_v36, %v1049_v37  ;;  %v979_v22 = vmax.f32 %v977_v18, %v978_v3  ;;  %v1034_v9 = vmax.f32 %v963_v4, %v887_v30  ;;  %v1064_v0 = vmax.f32 %v1062_v46, %v891_v10  ;;  %v893_v16 = vpop.f32.mrb[63].mxu1 }
 0x1a5   :  { %v931_v14 = vmul.f32 %v2476_v43, %v910_v15  ;;  %v1121_v1 = vmax.f32 %v1119_v45, %v1120_v25  ;;  %v925_v27 = vmax.f32 %v923_v32, %v924_v23  ;;  %v964_v2 = vmax.f32 %v698_v40, %v700_v7  ;;  %v2479_v45 = vld [vmem:[%s3822_s2 + $0x3] ss:$0 sm:$0xff] }
 0x1a6   :  { %v1105_v20 = vmax.f32 %v1034_v9, %v889_v39  ;;  %v1065_v35 = vmax.f32 %v1063_v5, %v1064_v0  ;;  %v993_v36 = vmax.f32 %v3367_v13, %v700_v7  ;;  %v1000_v18 = vmul.f32 %v2477_v34, %v979_v22 }
 0x1a7   :  { %v1035_v11 = vmax.f32 %v964_v2, %v891_v10  ;;  %v1135_v46 = vmax.f32 %v3369_v33, %v893_v16  ;;  %v932_v31 = vmul.f32 %v2476_v43, %v925_v27  ;;  %v1071_v32 = vmul.f32 %v2478_v38, %v1050_v42 }
 0x1a8   :  { %1176 = vst [vmem:[#allocation2 + $0xf0] sm:$0xff] %v1105_v20  ;;  %v994_v12 = vmax.f32 %v992_v26, %v993_v36  ;;  %v1002_v19 = vadd.f32 %v1000_v18, %v931_v14  ;;  %v1142_v5 = vmul.f32 %v2479_v45, %v1121_v1  ;;  %v1072_v13 = vmul.f32 %v2478_v38, %v1065_v35 }
 0x1a9   :  { %v1106_v17 = vmax.f32 %v1035_v11, %v893_v16  ;;  %v1136_v47 = vmax.f32 %v1134_v29, %v1135_v46 }
 0x1aa   :  { %v1001_v21 = vmul.f32 %v2477_v34, %v994_v12  ;;  %v1073_v41 = vadd.f32 %v1071_v32, %v1002_v19 }
 0x1ab   :  { %1177 = vst [vmem:[#allocation2 + $0xf8] sm:$0xff] %v1106_v17  ;;  %v1143_v33 = vmul.f32 %v2479_v45, %v1136_v47 }
 0x1ac   :  { %v1003_v24 = vadd.f32 %v1001_v21, %v932_v31  ;;  %v1144_v6 = vadd.f32 %v1142_v5, %v1073_v41 }
 0x1ae   :  { %v1074_v8 = vadd.f32 %v1072_v13, %v1003_v24  ;;  %1178 = vst [vmem:[#allocation3] sm:$0xff] %v1144_v6 }
 0x1b0   :  { %v1145_v44 = vadd.f32 %v1143_v33, %v1074_v8 }
 0x1b2   :  { %1179 = vst [vmem:[#allocation3 + $0x8] sm:$0xff] %v1145_v44 }
 0x1b3 LB: > { %2673 = vmatprep.mubr.msk.bf16.mxu0 %vm365_vm0, %v2972_v28  ;;  %2721 = vmatprep.mubr.msk.bf16.mxu1 %vm365_vm0, %v2972_v28  ;;  %s2560_s10 = sshll.u32 %s2914_s9, 8  ;;  %s2480_s12 = sshll.u32 %s2914_s9, 2  ;;  %s2914_s9 = sphi %s3393_s9, %s1185_s9  }
 0x1b4   : > { %s3403_s11 = scalar_lea.vmem [#allocation4], %s2560_s10  ;;  %s3797_s15 = scalar_lea.vmem %s3822_s2, %s2480_s12 }
 0x1b5   : > { %v2844_v26 = vld [vmem:[%s3403_s11 + $0x40] sm:$0xff]   ;;  %v2848_v37 = vld [vmem:[%s3403_s11 + $0x48] sm:$0xff]   ;;  %v2852_v25 = vld [vmem:[%s3403_s11 + $0x50] sm:$0xff]   ;;  %s1185_s9 = sadd.s32 1, %s2914_s9  }
 0x1b6   : > { %v2845_v29 = vld [vmem:[%s3403_s11 + $0xc0] sm:$0xff]   ;;  %2769 = vmatprep.subr.msk.bf16.mxu0 %vm365_vm0, %v2844_v26  ;;  %v2849_v3 = vld [vmem:[%s3403_s11 + $0xc8] sm:$0xff]   ;;  %v2853_v10 = vld [vmem:[%s3403_s11 + $0xd0] sm:$0xff]   ;;  %p1182_p8 = scmp.ge.s32.totalorder %s1185_s9, 4  }
 0x1b7   : > { %v2846_v30 = vld [vmem:[%s3403_s11] sm:$0xff]   ;;  %2777 = vmatprep.subr.msk.bf16.mxu1 %vm365_vm0, %v2845_v29  ;;  %v2850_v39 = vld [vmem:[%s3403_s11 + $0x8] sm:$0xff]   ;;  %v2854_v7 = vld [vmem:[%s3403_s11 + $0x10] sm:$0xff]  }
 0x1b8   : > { %v2847_v48 = vld [vmem:[%s3403_s11 + $0x80] sm:$0xff]   ;;  %v1415_v43 = vsel %vm365_vm0, %v2846_v30, 0  ;;  %v2851_v40 = vld [vmem:[%s3403_s11 + $0x88] sm:$0xff]   ;;  %v1418_v15 = vsel %vm365_vm0, %v2850_v39, 0  ;;  %v2855_v42 = vld [vmem:[%s3403_s11 + $0x90] sm:$0xff]   ;;  %v1421_v22 = vsel %vm365_vm0, %v2854_v7, 0 }
 0x1b9   : > { %2658 = vmatpush3.bf16.xpose.msra.mxu0 %v1415_v43  ;;  %v1463_v4 = vsel %vm365_vm0, %v2847_v48, 0  ;;  %v1466_v23 = vsel %vm365_vm0, %v2851_v40, 0  ;;  %v2856_v9 = vld [vmem:[%s3403_s11 + $0x58] sm:$0xff]   ;;  %v1469_v0 = vsel %vm365_vm0, %v2855_v42, 0  ;;  %v2860_v27 = vld [vmem:[%s3403_s11 + $0x60] sm:$0xff]   ;;  %v2864_v18 = vld [vmem:[%s3403_s11 + $0x68] sm:$0xff]  }
 0x1ba   : > { %2706 = vmatpush3.bf16.xpose.msra.mxu1 %v1463_v4  ;;  %2770 = vmatprep.subr.msk.bf16.mxu0 %vm365_vm0, %v2848_v37  ;;  %v2857_v34 = vld [vmem:[%s3403_s11 + $0xd8] sm:$0xff]   ;;  %v2861_v38 = vld [vmem:[%s3403_s11 + $0xe0] sm:$0xff]   ;;  %v2865_v46 = vld [vmem:[%s3403_s11 + $0xe8] sm:$0xff]  }
 0x1bb   : > { %2778 = vmatprep.subr.msk.bf16.mxu1 %vm365_vm0, %v2849_v3  ;;  %v2858_v16 = vld [vmem:[%s3403_s11 + $0x18] sm:$0xff]   ;;  %v2862_v20 = vld [vmem:[%s3403_s11 + $0x20] sm:$0xff]   ;;  %v2866_v31 = vld [vmem:[%s3403_s11 + $0x28] sm:$0xff]  }
 0x1bc   : > { %v2859_v14 = vld [vmem:[%s3403_s11 + $0x98] sm:$0xff]   ;;  %v1424_v1 = vsel %vm365_vm0, %v2858_v16, 0  ;;  %v2863_v35 = vld [vmem:[%s3403_s11 + $0xa0] sm:$0xff]   ;;  %v1427_v36 = vsel %vm365_vm0, %v2862_v20, 0  ;;  %v2867_v12 = vld [vmem:[%s3403_s11 + $0xa8] sm:$0xff]   ;;  %v1430_v45 = vsel %vm365_vm0, %v2866_v31, 0 }
 0x1bd   : > { %v1472_v2 = vsel %vm365_vm0, %v2859_v14, 0  ;;  %v1475_v11 = vsel %vm365_vm0, %v2863_v35, 0  ;;  %v2868_v32 = vld [vmem:[%s3403_s11 + $0x70] sm:$0xff]   ;;  %v1478_v19 = vsel %vm365_vm0, %v2867_v12, 0  ;;  %v2872_v5 = vld [vmem:[%s3403_s11 + $0x78] sm:$0xff]   ;;  %v2154_v7 = vld [vmem:[#allocation2 + $0x8] sm:$0xff] }
 0x1be   : > { %v2869_v17 = vld [vmem:[%s3403_s11 + $0xf0] sm:$0xff]   ;;  %v2873_v24 = vld [vmem:[%s3403_s11 + $0xf8] sm:$0xff]  }
 0x1bf   : > { %v2870_v47 = vld [vmem:[%s3403_s11 + $0x30] sm:$0xff]   ;;  %v2874_v6 = vld [vmem:[%s3403_s11 + $0x38] sm:$0xff]  }
 0x1c0   : > { %v2871_v21 = vld [vmem:[%s3403_s11 + $0xb0] sm:$0xff]   ;;  %v1433_v41 = vsel %vm365_vm0, %v2870_v47, 0  ;;  %v2875_v8 = vld [vmem:[%s3403_s11 + $0xb8] sm:$0xff]   ;;  %v1436_v33 = vsel %vm365_vm0, %v2874_v6, 0 }
 0x1c1   : > { %2660 = vmatpush3.bf16.xpose.msra.mxu0 %v1418_v15  ;;  %v1481_v13 = vsel %vm365_vm0, %v2871_v21, 0  ;;  %v1484_v44 = vsel %vm365_vm0, %v2875_v8, 0  ;;  %v2156_v31 = vld [vmem:[#allocation2 + $0x18] sm:$0xff] }
 0x1c2   : > { %2708 = vmatpush3.bf16.xpose.msra.mxu1 %v1466_v23  ;;  %2771 = vmatprep.subr.msk.bf16.mxu0 %vm365_vm0, %v2852_v25  ;;  %v2153_v25 = vld [vmem:[#allocation2] sm:$0xff] }
 0x1c3   : > { %2779 = vmatprep.subr.msk.bf16.mxu1 %vm365_vm0, %v2853_v10 }
 0x1c9   : > { %2662 = vmatpush3.bf16.xpose.msra.mxu0 %v1421_v22 }
 0x1ca   : > { %2710 = vmatpush3.bf16.xpose.msra.mxu1 %v1469_v0  ;;  %2772 = vmatprep.subr.msk.bf16.mxu0 %vm365_vm0, %v2856_v9 }
 0x1cb   : > { %2780 = vmatprep.subr.msk.bf16.mxu1 %vm365_vm0, %v2857_v34 }
 0x1d1   : > { %2664 = vmatpush3.bf16.xpose.msra.mxu0 %v1424_v1 }
 0x1d2   : > { %2712 = vmatpush3.bf16.xpose.msra.mxu1 %v1472_v2  ;;  %2773 = vmatprep.subr.msk.bf16.mxu0 %vm365_vm0, %v2860_v27 }
 0x1d3   : > { %2781 = vmatprep.subr.msk.bf16.mxu1 %vm365_vm0, %v2861_v38 }
 0x1d9   : > { %2666 = vmatpush3.bf16.xpose.msra.mxu0 %v1427_v36 }
 0x1da   : > { %2714 = vmatpush3.bf16.xpose.msra.mxu1 %v1475_v11  ;;  %2774 = vmatprep.subr.msk.bf16.mxu0 %vm365_vm0, %v2864_v18  ;;  %v2155_v18 = vld [vmem:[#allocation2 + $0x10] sm:$0xff] }
 0x1db   : > { %2782 = vmatprep.subr.msk.bf16.mxu1 %vm365_vm0, %v2865_v46 }
 0x1e1   : > { %2668 = vmatpush3.bf16.xpose.msra.mxu0 %v1430_v45 }
 0x1e2   : > { %2716 = vmatpush3.bf16.xpose.msra.mxu1 %v1478_v19  ;;  %2775 = vmatprep.subr.msk.bf16.mxu0 %vm365_vm0, %v2868_v32 }
 0x1e3   : > { %2783 = vmatprep.subr.msk.bf16.mxu1 %vm365_vm0, %v2869_v17 }
 0x1e9   : > { %2670 = vmatpush3.bf16.xpose.msra.mxu0 %v1433_v41 }
 0x1ea   : > { %2718 = vmatpush3.bf16.xpose.msra.mxu1 %v1481_v13  ;;  %2776 = vmatprep.subr.msk.bf16.mxu0 %vm365_vm0, %v2872_v5 }
 0x1eb   : > { %2784 = vmatprep.subr.msk.bf16.mxu1 %vm365_vm0, %v2873_v24 }
 0x1f1   : > { %2672 = vmatpush3.bf16.xpose.msra.mxu0 %v1436_v33 }
 0x1f2   : > { %2720 = vmatpush3.bf16.xpose.msra.mxu1 %v1484_v44 }
 0x1f8   : > { %2674 = vmatmul.mubr.msk.bf16.vlgmr.msra.gmra.mrb[0].mxu0 %vm365_vm0, %v2972_v28 }
 0x1f9   : > { %2722 = vmatmul.mubr.msk.bf16.vlgmr.msra.gmra.mrb[0].mxu1 %vm365_vm0, %v2972_v28  ;;  %2675 = vmatprep.mubr.msk.bf16.mxu0 %vm365_vm0, %v2995_v49 }
 0x1fa   : > { %2723 = vmatprep.mubr.msk.bf16.mxu1 %vm365_vm0, %v2995_v49 }
 0x200   : > { %2676 = vmatmul.mubr.msk.bf16.gmra.mrb[4].mxu0 %vm365_vm0, %v2995_v49 }
 0x201   : > { %2724 = vmatmul.mubr.msk.bf16.gmra.mrb[4].mxu1 %vm365_vm0, %v2995_v49  ;;  %2677 = vmatprep.mubr.msk.bf16.mxu0 %vm365_vm0, %v3008_v50 }
 0x202   : > { %2725 = vmatprep.mubr.msk.bf16.mxu1 %vm365_vm0, %v3008_v50 }
 0x208   : > { %2678 = vmatmul.mubr.msk.bf16.gmra.mrb[8].mxu0 %vm365_vm0, %v3008_v50 }
 0x209   : > { %2726 = vmatmul.mubr.msk.bf16.gmra.mrb[8].mxu1 %vm365_vm0, %v3008_v50  ;;  %2679 = vmatprep.mubr.msk.bf16.mxu0 %vm365_vm0, %v3021_v51 }
 0x20a   : > { %2727 = vmatprep.mubr.msk.bf16.mxu1 %vm365_vm0, %v3021_v51 }
 0x210   : > { %2680 = vmatmul.mubr.msk.bf16.gmra.mrb[12].mxu0 %vm365_vm0, %v3021_v51 }
 0x211   : > { %2728 = vmatmul.mubr.msk.bf16.gmra.mrb[12].mxu1 %vm365_vm0, %v3021_v51  ;;  %2681 = vmatprep.mubr.msk.bf16.mxu0 %vm365_vm0, %v3034_v52 }
 0x212   : > { %2729 = vmatprep.mubr.msk.bf16.mxu1 %vm365_vm0, %v3034_v52 }
 0x218   : > { %2682 = vmatmul.mubr.msk.bf16.gmra.mrb[16].mxu0 %vm365_vm0, %v3034_v52 }
 0x219   : > { %2730 = vmatmul.mubr.msk.bf16.gmra.mrb[16].mxu1 %vm365_vm0, %v3034_v52  ;;  %2683 = vmatprep.mubr.msk.bf16.mxu0 %vm365_vm0, %v3047_v53 }
 0x21a   : > { %2731 = vmatprep.mubr.msk.bf16.mxu1 %vm365_vm0, %v3047_v53 }
 0x220   : > { %2684 = vmatmul.mubr.msk.bf16.gmra.mrb[20].mxu0 %vm365_vm0, %v3047_v53 }
 0x221   : > { %2732 = vmatmul.mubr.msk.bf16.gmra.mrb[20].mxu1 %vm365_vm0, %v3047_v53  ;;  %2685 = vmatprep.mubr.msk.bf16.mxu0 %vm365_vm0, %v3060_v54 }
 0x222   : > { %2733 = vmatprep.mubr.msk.bf16.mxu1 %vm365_vm0, %v3060_v54 }
 0x228   : > { %2686 = vmatmul.mubr.msk.bf16.gmra.mrb[24].mxu0 %vm365_vm0, %v3060_v54 }
 0x229   : > { %2734 = vmatmul.mubr.msk.bf16.gmra.mrb[24].mxu1 %vm365_vm0, %v3060_v54  ;;  %2687 = vmatprep.mubr.msk.bf16.mxu0 %vm365_vm0, %v3073_v55 }
 0x22a   : > { %2735 = vmatprep.mubr.msk.bf16.mxu1 %vm365_vm0, %v3073_v55 }
 0x230   : > { %2688 = vmatmul.mubr.msk.bf16.gmra.mrb[28].mxu0 %vm365_vm0, %v3073_v55 }
 0x231   : > { %2736 = vmatmul.mubr.msk.bf16.gmra.mrb[28].mxu1 %vm365_vm0, %v3073_v55  ;;  %2689 = vmatprep.mubr.msk.bf16.mxu0 %vm365_vm0, %v3086_v56 }
 0x232   : > { %2737 = vmatprep.mubr.msk.bf16.mxu1 %vm365_vm0, %v3086_v56 }
 0x238   : > { %2690 = vmatmul.mubr.msk.bf16.gmra.mrb[32].mxu0 %vm365_vm0, %v3086_v56 }
 0x239   : > { %2738 = vmatmul.mubr.msk.bf16.gmra.mrb[32].mxu1 %vm365_vm0, %v3086_v56  ;;  %2691 = vmatprep.mubr.msk.bf16.mxu0 %vm365_vm0, %v3099_v57 }
 0x23a   : > { %2739 = vmatprep.mubr.msk.bf16.mxu1 %vm365_vm0, %v3099_v57 }
 0x240   : > { %2692 = vmatmul.mubr.msk.bf16.gmra.mrb[36].mxu0 %vm365_vm0, %v3099_v57 }
 0x241   : > { %2740 = vmatmul.mubr.msk.bf16.gmra.mrb[36].mxu1 %vm365_vm0, %v3099_v57  ;;  %2693 = vmatprep.mubr.msk.bf16.mxu0 %vm365_vm0, %v3112_v58 }
 0x242   : > { %2741 = vmatprep.mubr.msk.bf16.mxu1 %vm365_vm0, %v3112_v58 }
 0x248   : > { %2694 = vmatmul.mubr.msk.bf16.gmra.mrb[40].mxu0 %vm365_vm0, %v3112_v58 }
 0x249   : > { %2742 = vmatmul.mubr.msk.bf16.gmra.mrb[40].mxu1 %vm365_vm0, %v3112_v58  ;;  %2695 = vmatprep.mubr.msk.bf16.mxu0 %vm365_vm0, %v3125_v59 }
 0x24a   : > { %2743 = vmatprep.mubr.msk.bf16.mxu1 %vm365_vm0, %v3125_v59 }
 0x250   : > { %2696 = vmatmul.mubr.msk.bf16.gmra.mrb[44].mxu0 %vm365_vm0, %v3125_v59 }
 0x251   : > { %2744 = vmatmul.mubr.msk.bf16.gmra.mrb[44].mxu1 %vm365_vm0, %v3125_v59  ;;  %2697 = vmatprep.mubr.msk.bf16.mxu0 %vm365_vm0, %v3138_v60 }
 0x252   : > { %2745 = vmatprep.mubr.msk.bf16.mxu1 %vm365_vm0, %v3138_v60 }
 0x258   : > { %2698 = vmatmul.mubr.msk.bf16.gmra.mrb[48].mxu0 %vm365_vm0, %v3138_v60 }
 0x259   : > { %2746 = vmatmul.mubr.msk.bf16.gmra.mrb[48].mxu1 %vm365_vm0, %v3138_v60  ;;  %2699 = vmatprep.mubr.msk.bf16.mxu0 %vm365_vm0, %v3151_v61 }
 0x25a   : > { %2747 = vmatprep.mubr.msk.bf16.mxu1 %vm365_vm0, %v3151_v61 }
 0x260   : > { %2700 = vmatmul.mubr.msk.bf16.gmra.mrb[52].mxu0 %vm365_vm0, %v3151_v61 }
 0x261   : > { %2748 = vmatmul.mubr.msk.bf16.gmra.mrb[52].mxu1 %vm365_vm0, %v3151_v61  ;;  %2701 = vmatprep.mubr.msk.bf16.mxu0 %vm365_vm0, %v3164_v62 }
 0x262   : > { %2749 = vmatprep.mubr.msk.bf16.mxu1 %vm365_vm0, %v3164_v62 }
 0x268   : > { %2702 = vmatmul.mubr.msk.bf16.gmra.mrb[56].mxu0 %vm365_vm0, %v3164_v62 }
 0x269   : > { %2750 = vmatmul.mubr.msk.bf16.gmra.mrb[56].mxu1 %vm365_vm0, %v3164_v62  ;;  %2703 = vmatprep.mubr.msk.bf16.mxu0 %vm365_vm0, %v3177_v63 }
 0x26a   : > { %2751 = vmatprep.mubr.msk.bf16.mxu1 %vm365_vm0, %v3177_v63 }
 0x270   : > { %2704 = vmatmul.mubr.msk.bf16.gmra.mrb[60].mxu0 %vm365_vm0, %v3177_v63 }
 0x271   : > { %2752 = vmatmul.mubr.msk.bf16.gmra.mrb[60].mxu1 %vm365_vm0, %v3177_v63 }
 0x2cb   : > { %v3593_v26 = vpop.f32.mrb[0].mxu0 }
 0x2cc   : > { %v3595_v29 = vpop.f32.mrb[0].mxu1  ;;  %v3597_v30 = vpop.f32.mrb[1].mxu0 }
 0x2cd   : > { %v1934_v48 = vmax.f32 %v3593_v26, %v3597_v30  ;;  %v3601_v43 = vpop.f32.mrb[1].mxu1  ;;  %v3603_v37 = vpop.f32.mrb[2].mxu0 }
 0x2ce   : > { %v3605_v4 = vpop.f32.mrb[2].mxu1  ;;  %v3607_v3 = vpop.f32.mrb[3].mxu0 }
 0x2cf   : > { %v2007_v39 = vmax.f32 %v1934_v48, %v3595_v29  ;;  %v1935_v40 = vmax.f32 %v3603_v37, %v3607_v3  ;;  %v3612_v15 = vpop.f32.mrb[3].mxu1 }
 0x2d1   : > { %v2080_v23 = vmax.f32 %v2007_v39, %v3601_v43  ;;  %v2008_v10 = vmax.f32 %v1935_v40, %v3605_v4 }
 0x2d3   : > { %v2185_v42 = vmax.f32 %v2153_v25, %v2080_v23  ;;  %v2081_v22 = vmax.f32 %v2008_v10, %v3612_v15  ;;  %v3617_v9 = vpop.f32.mrb[4].mxu0 }
 0x2d4   : > { %v3619_v0 = vpop.f32.mrb[4].mxu1  ;;  %v3621_v34 = vpop.f32.mrb[5].mxu0 }
 0x2d5   : > { %2217 = vst [vmem:[#allocation2] sm:$0xff] %v2185_v42  ;;  %v2186_v16 = vmax.f32 %v2154_v7, %v2081_v22  ;;  %v1936_v14 = vmax.f32 %v3617_v9, %v3621_v34  ;;  %v3625_v1 = vpop.f32.mrb[5].mxu1  ;;  %v3627_v27 = vpop.f32.mrb[6].mxu0  ;;  %v2158_v42 = vld [vmem:[#allocation2 + $0x28] sm:$0xff] }
 0x2d6   : > { %v3629_v2 = vpop.f32.mrb[6].mxu1  ;;  %v3631_v38 = vpop.f32.mrb[7].mxu0 }
 0x2d7   : > { %2218 = vst [vmem:[#allocation2 + $0x8] sm:$0xff] %v2186_v16  ;;  %v2009_v20 = vmax.f32 %v1936_v14, %v3619_v0  ;;  %v1937_v35 = vmax.f32 %v3627_v27, %v3631_v38  ;;  %v3636_v36 = vpop.f32.mrb[7].mxu1 }
 0x2d9   : > { %v2082_v11 = vmax.f32 %v2009_v20, %v3625_v1  ;;  %v2010_v46 = vmax.f32 %v1937_v35, %v3629_v2 }
 0x2db   : > { %v2187_v12 = vmax.f32 %v2155_v18, %v2082_v11  ;;  %v2083_v45 = vmax.f32 %v2010_v46, %v3636_v36  ;;  %v1564_v32 = vpop.f32.mrb[8].mxu0 }
 0x2dc   : > { %v1896_v19 = vmax.f32 %v3593_v26, %v1564_v32  ;;  %v1757_v17 = vpop.f32.mrb[8].mxu1  ;;  %v1566_v47 = vpop.f32.mrb[9].mxu0 }
 0x2dd   : > { %2219 = vst [vmem:[#allocation2 + $0x10] sm:$0xff] %v2187_v12  ;;  %v2188_v21 = vmax.f32 %v2156_v31, %v2083_v45  ;;  %v2039_v41 = vmax.f32 %v3595_v29, %v1757_v17  ;;  %v1938_v5 = vmax.f32 %v1564_v32, %v1566_v47  ;;  %v1966_v13 = vmax.f32 %v3597_v30, %v1566_v47  ;;  %v1759_v24 = vpop.f32.mrb[9].mxu1  ;;  %v1568_v6 = vpop.f32.mrb[10].mxu0  ;;  %v2157_v29 = vld [vmem:[#allocation2 + $0x20] sm:$0xff] }
 0x2de   : > { %v2112_v8 = vmax.f32 %v3601_v43, %v1759_v24  ;;  %v1911_v33 = vmax.f32 %v3603_v37, %v1568_v6  ;;  %v1761_v44 = vpop.f32.mrb[10].mxu1  ;;  %v1570_v48 = vpop.f32.mrb[11].mxu0  ;;  %v2256_v28 = vld [vmem:[#allocation2 + $0x8] sm:$0xff] (%p1182_p8) }
 0x2df   : > { %2220 = vst [vmem:[#allocation2 + $0x18] sm:$0xff] %v2188_v21  ;;  %v2011_v39 = vmax.f32 %v1938_v5, %v1757_v17  ;;  %v2054_v26 = vmax.f32 %v3605_v4, %v1761_v44  ;;  %v1939_v40 = vmax.f32 %v1568_v6, %v1570_v48  ;;  %v1981_v25 = vmax.f32 %v3607_v3, %v1570_v48  ;;  %v1763_v23 = vpop.f32.mrb[11].mxu1  ;;  %v2160_v6 = vld [vmem:[#allocation2 + $0x38] sm:$0xff] }
 0x2e0   : > { %v2127_v10 = vmax.f32 %v3612_v15, %v1763_v23  ;;  %v2258_v51 = vmul.f32 (%p1182_p8), 0.1295636, %v2256_v28 }
 0x2e1   : > { %v2084_v30 = vmax.f32 %v2011_v39, %v1759_v24  ;;  %v2012_v7 = vmax.f32 %v1939_v40, %v1761_v44 }
 0x2e3   : > { %v2189_v22 = vmax.f32 %v2157_v29, %v2084_v30  ;;  %v2085_v43 = vmax.f32 %v2012_v7, %v1763_v23  ;;  %v1574_v16 = vpop.f32.mrb[12].mxu0 }
 0x2e4   : > { %v1897_v37 = vmax.f32 %v3617_v9, %v1574_v16  ;;  %v1767_v14 = vpop.f32.mrb[12].mxu1  ;;  %v1576_v20 = vpop.f32.mrb[13].mxu0 }
 0x2e5   : > { %2221 = vst [vmem:[#allocation2 + $0x20] sm:$0xff] %v2189_v22  ;;  %v2190_v35 = vmax.f32 %v2158_v42, %v2085_v43  ;;  %v2040_v4 = vmax.f32 %v3619_v0, %v1767_v14  ;;  %v1940_v18 = vmax.f32 %v1574_v16, %v1576_v20  ;;  %v1967_v3 = vmax.f32 %v3621_v34, %v1576_v20  ;;  %v1769_v11 = vpop.f32.mrb[13].mxu1  ;;  %v1578_v46 = vpop.f32.mrb[14].mxu0  ;;  %v2159_v0 = vld [vmem:[#allocation2 + $0x30] sm:$0xff] }
 0x2e6   : > { %v2113_v15 = vmax.f32 %v3625_v1, %v1769_v11  ;;  %v1912_v31 = vmax.f32 %v3627_v27, %v1578_v46  ;;  %v1771_v12 = vpop.f32.mrb[14].mxu1  ;;  %v1580_v45 = vpop.f32.mrb[15].mxu0  ;;  %v2260_v52 = vld [vmem:[#allocation2 + $0x18] sm:$0xff] (%p1182_p8) }
 0x2e7   : > { %2222 = vst [vmem:[#allocation2 + $0x28] sm:$0xff] %v2190_v35  ;;  %v2013_v32 = vmax.f32 %v1940_v18, %v1767_v14  ;;  %v2055_v9 = vmax.f32 %v3629_v2, %v1771_v12  ;;  %v1941_v17 = vmax.f32 %v1578_v46, %v1580_v45  ;;  %v1982_v47 = vmax.f32 %v3631_v38, %v1580_v45  ;;  %v1773_v21 = vpop.f32.mrb[15].mxu1  ;;  %v2161_v35 = vld [vmem:[#allocation2 + $0x40] sm:$0xff]  ;;  %v2162_v46 = vld [vmem:[#allocation2 + $0x48] sm:$0xff] }
 0x2e8   : > { %v2128_v5 = vmax.f32 %v3636_v36, %v1773_v21  ;;  %v2262_v55 = vmul.f32 (%p1182_p8), 0.13550106, %v2260_v52 }
 0x2e9   : > { %v2086_v34 = vmax.f32 %v2013_v32, %v1769_v11  ;;  %v2014_v24 = vmax.f32 %v1941_v17, %v1771_v12 }
 0x2ea   :  { %v2264_v62 = vadd.f32 (%p1182_p8), %v2262_v55, %v2258_v51 }
 0x2eb   : > { %v2191_v44 = vmax.f32 %v2159_v0, %v2086_v34  ;;  %v2087_v1 = vmax.f32 %v2014_v24, %v1773_v21  ;;  %v1584_v48 = vpop.f32.mrb[16].mxu0 }
 0x2ec   : > { %v3657_v27 = vmax.f32 %v1896_v19, %v1584_v48  ;;  %v1777_v39 = vpop.f32.mrb[16].mxu1  ;;  %v1586_v40 = vpop.f32.mrb[17].mxu0 }
 0x2ed   : > { %2223 = vst [vmem:[#allocation2 + $0x30] sm:$0xff] %v2191_v44  ;;  %v2192_v23 = vmax.f32 %v2160_v6, %v2087_v1  ;;  %v3659_v2 = vmax.f32 %v2039_v41, %v1777_v39  ;;  %v1942_v29 = vmax.f32 %v1584_v48, %v1586_v40  ;;  %v3661_v38 = vmax.f32 %v1966_v13, %v1586_v40  ;;  %v1779_v30 = vpop.f32.mrb[17].mxu1  ;;  %v1588_v7 = vpop.f32.mrb[18].mxu0 }
 0x2ee   : > { %v3663_v36 = vmax.f32 %v2112_v8, %v1779_v30  ;;  %v3665_v42 = vmax.f32 %v1911_v33, %v1588_v7  ;;  %v1781_v22 = vpop.f32.mrb[18].mxu1  ;;  %v1590_v43 = vpop.f32.mrb[19].mxu0  ;;  %v2266_v53 = vld [vmem:[#allocation2 + $0x28] sm:$0xff] (%p1182_p8) }
 0x2ef   : > { %2224 = vst [vmem:[#allocation2 + $0x38] sm:$0xff] %v2192_v23  ;;  %v2015_v19 = vmax.f32 %v1942_v29, %v1777_v39  ;;  %v3667_v16 = vmax.f32 %v2054_v26, %v1781_v22  ;;  %v1943_v14 = vmax.f32 %v1588_v7, %v1590_v43  ;;  %v3669_v20 = vmax.f32 %v1981_v25, %v1590_v43  ;;  %v1783_v41 = vpop.f32.mrb[19].mxu1  ;;  %v2163_v23 = vld [vmem:[#allocation2 + $0x50] sm:$0xff]  ;;  %v2164_v7 = vld [vmem:[#allocation2 + $0x58] sm:$0xff] }
 0x2f0   : > { %v3671_v18 = vmax.f32 %v2127_v10, %v1783_v41  ;;  %v2268_v56 = vmul.f32 (%p1182_p8), -0.040960558, %v2266_v53 }
 0x2f1   : > { %v2088_v13 = vmax.f32 %v2015_v19, %v1779_v30  ;;  %v2016_v11 = vmax.f32 %v1943_v14, %v1781_v22 }
 0x2f3   : > { %v2193_v8 = vmax.f32 %v2161_v35, %v2088_v13  ;;  %v2089_v12 = vmax.f32 %v2016_v11, %v1783_v41  ;;  %v1594_v33 = vpop.f32.mrb[20].mxu0 }
 0x2f4   : > { %v3673_v45 = vmax.f32 %v1897_v37, %v1594_v33  ;;  %v1787_v32 = vpop.f32.mrb[20].mxu1  ;;  %v1596_v17 = vpop.f32.mrb[21].mxu0 }
 0x2f5   : > { %2225 = vst [vmem:[#allocation2 + $0x40] sm:$0xff] %v2193_v8  ;;  %v2194_v26 = vmax.f32 %v2162_v46, %v2089_v12  ;;  %v3675_v21 = vmax.f32 %v2040_v4, %v1787_v32  ;;  %v1944_v25 = vmax.f32 %v1594_v33, %v1596_v17  ;;  %v3677_v0 = vmax.f32 %v1967_v3, %v1596_v17  ;;  %v1789_v34 = vpop.f32.mrb[21].mxu1  ;;  %v1598_v10 = vpop.f32.mrb[22].mxu0 }
 0x2f6   : > { %v3679_v24 = vmax.f32 %v2113_v15, %v1789_v34  ;;  %v3681_v6 = vmax.f32 %v1912_v31, %v1598_v10  ;;  %v1791_v44 = vpop.f32.mrb[22].mxu1  ;;  %v1600_v1 = vpop.f32.mrb[23].mxu0  ;;  %v2272_v57 = vld [vmem:[#allocation2 + $0x38] sm:$0xff] (%p1182_p8) }
 0x2f7   : > { %2226 = vst [vmem:[#allocation2 + $0x48] sm:$0xff] %v2194_v26  ;;  %v2017_v37 = vmax.f32 %v1944_v25, %v1787_v32  ;;  %v3683_v48 = vmax.f32 %v2055_v9, %v1791_v44  ;;  %v1945_v39 = vmax.f32 %v1598_v10, %v1600_v1  ;;  %v3685_v40 = vmax.f32 %v1982_v47, %v1600_v1  ;;  %v1793_v4 = vpop.f32.mrb[23].mxu1  ;;  %v2166_v10 = vld [vmem:[#allocation2 + $0x68] sm:$0xff] }
 0x2f8   : > { %v3687_v29 = vmax.f32 %v2128_v5, %v1793_v4  ;;  %v2274_v63 = vmul.f32 (%p1182_p8), -0.077188544, %v2272_v57 }
 0x2f9   : > { %v2090_v3 = vmax.f32 %v2017_v37, %v1789_v34  ;;  %v2018_v30 = vmax.f32 %v1945_v39, %v1791_v44 }
 0x2fb   : > { %v2195_v15 = vmax.f32 %v2163_v23, %v2090_v3  ;;  %v2091_v22 = vmax.f32 %v2018_v30, %v1793_v4  ;;  %v1604_v31 = vpop.f32.mrb[24].mxu0 }
 0x2fc   : > { %v1900_v43 = vmax.f32 %v3657_v27, %v1604_v31  ;;  %v1797_v19 = vpop.f32.mrb[24].mxu1  ;;  %v1606_v14 = vpop.f32.mrb[25].mxu0 }
 0x2fd   : > { %2227 = vst [vmem:[#allocation2 + $0x50] sm:$0xff] %v2195_v15  ;;  %v2196_v9 = vmax.f32 %v2164_v7, %v2091_v22  ;;  %v2043_v41 = vmax.f32 %v3659_v2, %v1797_v19  ;;  %v1946_v47 = vmax.f32 %v1604_v31, %v1606_v14  ;;  %v1970_v35 = vmax.f32 %v3661_v38, %v1606_v14  ;;  %v1799_v13 = vpop.f32.mrb[25].mxu1  ;;  %v1608_v5 = vpop.f32.mrb[26].mxu0  ;;  %v2165_v2 = vld [vmem:[#allocation2 + $0x60] sm:$0xff] }
 0x2fe   : > { %v2116_v11 = vmax.f32 %v3663_v36, %v1799_v13  ;;  %v1915_v46 = vmax.f32 %v3665_v42, %v1608_v5  ;;  %v1801_v8 = vpop.f32.mrb[26].mxu1  ;;  %v1610_v12 = vpop.f32.mrb[27].mxu0  ;;  %v2278_v60 = vld [vmem:[#allocation2 + $0x48] sm:$0xff] (%p1182_p8) }
 0x2ff   : > { %2228 = vst [vmem:[#allocation2 + $0x58] sm:$0xff] %v2196_v9  ;;  %v2019_v33 = vmax.f32 %v1946_v47, %v1797_v19  ;;  %v2058_v27 = vmax.f32 %v3667_v16, %v1801_v8  ;;  %v1947_v32 = vmax.f32 %v1608_v5, %v1610_v12  ;;  %v1985_v17 = vmax.f32 %v3669_v20, %v1610_v12  ;;  %v1803_v26 = vpop.f32.mrb[27].mxu1  ;;  %v2168_v5 = vld [vmem:[#allocation2 + $0x78] sm:$0xff] }
 0x300   : > { %v2131_v25 = vmax.f32 %v3671_v18, %v1803_v26 }
 0x301   : > { %v2092_v38 = vmax.f32 %v2019_v33, %v1799_v13  ;;  %v2020_v34 = vmax.f32 %v1947_v32, %v1801_v8 }
 0x303   : > { %v2197_v44 = vmax.f32 %v2165_v2, %v2092_v38  ;;  %v2093_v36 = vmax.f32 %v2020_v34, %v1803_v26  ;;  %v1614_v1 = vpop.f32.mrb[28].mxu0 }
 0x304   : > { %v1901_v42 = vmax.f32 %v3673_v45, %v1614_v1  ;;  %v1807_v37 = vpop.f32.mrb[28].mxu1  ;;  %v1616_v39 = vpop.f32.mrb[29].mxu0 }
 0x305   : > { %2229 = vst [vmem:[#allocation2 + $0x60] sm:$0xff] %v2197_v44  ;;  %v2198_v4 = vmax.f32 %v2166_v10, %v2093_v36  ;;  %v2044_v16 = vmax.f32 %v3675_v21, %v1807_v37  ;;  %v1948_v23 = vmax.f32 %v1614_v1, %v1616_v39  ;;  %v1971_v20 = vmax.f32 %v3677_v0, %v1616_v39  ;;  %v1809_v3 = vpop.f32.mrb[29].mxu1  ;;  %v1618_v30 = vpop.f32.mrb[30].mxu0  ;;  %v2167_v21 = vld [vmem:[#allocation2 + $0x70] sm:$0xff] }
 0x306   : > { %v2117_v18 = vmax.f32 %v3679_v24, %v1809_v3  ;;  %v1916_v7 = vmax.f32 %v3681_v6, %v1618_v30  ;;  %v1811_v15 = vpop.f32.mrb[30].mxu1  ;;  %v1620_v22 = vpop.f32.mrb[31].mxu0 }
 0x307   : > { %2230 = vst [vmem:[#allocation2 + $0x68] sm:$0xff] %v2198_v4  ;;  %v2021_v31 = vmax.f32 %v1948_v23, %v1807_v37  ;;  %v2059_v45 = vmax.f32 %v3683_v48, %v1811_v15  ;;  %v1949_v19 = vmax.f32 %v1618_v30, %v1620_v22  ;;  %v1986_v14 = vmax.f32 %v3685_v40, %v1620_v22  ;;  %v1813_v9 = vpop.f32.mrb[31].mxu1  ;;  %v2169_v4 = vld [vmem:[#allocation2 + $0x80] sm:$0xff]  ;;  %v2170_v30 = vld [vmem:[#allocation2 + $0x88] sm:$0xff] }
 0x308   : > { %v2132_v47 = vmax.f32 %v3687_v29, %v1813_v9 }
 0x309   : > { %v2094_v0 = vmax.f32 %v2021_v31, %v1809_v3  ;;  %v2022_v13 = vmax.f32 %v1949_v19, %v1811_v15 }
 0x30b   : > { %v2199_v8 = vmax.f32 %v2167_v21, %v2094_v0  ;;  %v2095_v24 = vmax.f32 %v2022_v13, %v1813_v9  ;;  %v1624_v12 = vpop.f32.mrb[32].mxu0 }
 0x30c   : > { %v3705_v6 = vmax.f32 %v1900_v43, %v1624_v12  ;;  %v1817_v33 = vpop.f32.mrb[32].mxu1  ;;  %v1626_v32 = vpop.f32.mrb[33].mxu0 }
 0x30d   : > { %2231 = vst [vmem:[#allocation2 + $0x70] sm:$0xff] %v2199_v8  ;;  %v2200_v26 = vmax.f32 %v2168_v5, %v2095_v24  ;;  %v3707_v48 = vmax.f32 %v2043_v41, %v1817_v33  ;;  %v1950_v2 = vmax.f32 %v1624_v12, %v1626_v32  ;;  %v3709_v40 = vmax.f32 %v1970_v35, %v1626_v32  ;;  %v1819_v38 = vpop.f32.mrb[33].mxu1  ;;  %v1628_v34 = vpop.f32.mrb[34].mxu0 }
 0x30e   : > { %v3711_v29 = vmax.f32 %v2116_v11, %v1819_v38  ;;  %v3713_v10 = vmax.f32 %v1915_v46, %v1628_v34  ;;  %v1821_v44 = vpop.f32.mrb[34].mxu1  ;;  %v1630_v36 = vpop.f32.mrb[35].mxu0 }
 0x30f   : > { %2232 = vst [vmem:[#allocation2 + $0x78] sm:$0xff] %v2200_v26  ;;  %v2023_v43 = vmax.f32 %v1950_v2, %v1817_v33  ;;  %v3715_v1 = vmax.f32 %v2058_v27, %v1821_v44  ;;  %v1951_v37 = vmax.f32 %v1628_v34, %v1630_v36  ;;  %v3717_v39 = vmax.f32 %v1985_v17, %v1630_v36  ;;  %v1823_v41 = vpop.f32.mrb[35].mxu1  ;;  %v2171_v26 = vld [vmem:[#allocation2 + $0x90] sm:$0xff]  ;;  %v2172_v34 = vld [vmem:[#allocation2 + $0x98] sm:$0xff] }
 0x310   : > { %v3719_v23 = vmax.f32 %v2131_v25, %v1823_v41 }
 0x311   : > { %v2096_v35 = vmax.f32 %v2023_v43, %v1819_v38  ;;  %v2024_v3 = vmax.f32 %v1951_v37, %v1821_v44 }
 0x313   : > { %v2201_v11 = vmax.f32 %v2169_v4, %v2096_v35  ;;  %v2097_v15 = vmax.f32 %v2024_v3, %v1823_v41  ;;  %v1634_v46 = vpop.f32.mrb[36].mxu0 }
 0x314   : > { %v3721_v22 = vmax.f32 %v1901_v42, %v1634_v46  ;;  %v1827_v31 = vpop.f32.mrb[36].mxu1  ;;  %v1636_v19 = vpop.f32.mrb[37].mxu0 }
 0x315   : > { %2233 = vst [vmem:[#allocation2 + $0x80] sm:$0xff] %v2201_v11  ;;  %v2202_v27 = vmax.f32 %v2170_v30, %v2097_v15  ;;  %v3723_v9 = vmax.f32 %v2044_v16, %v1827_v31  ;;  %v1952_v17 = vmax.f32 %v1634_v46, %v1636_v19  ;;  %v3725_v21 = vmax.f32 %v1971_v20, %v1636_v19  ;;  %v1829_v0 = vpop.f32.mrb[37].mxu1  ;;  %v1638_v25 = vpop.f32.mrb[38].mxu0 }
 0x316   : > { %v3727_v13 = vmax.f32 %v2117_v18, %v1829_v0  ;;  %v3729_v5 = vmax.f32 %v1916_v7, %v1638_v25  ;;  %v1831_v8 = vpop.f32.mrb[38].mxu1  ;;  %v1640_v24 = vpop.f32.mrb[39].mxu0 }
 0x317   : > { %2234 = vst [vmem:[#allocation2 + $0x88] sm:$0xff] %v2202_v27  ;;  %v2025_v42 = vmax.f32 %v1952_v17, %v1827_v31  ;;  %v3731_v12 = vmax.f32 %v2059_v45, %v1831_v8  ;;  %v1953_v33 = vmax.f32 %v1638_v25, %v1640_v24  ;;  %v3733_v32 = vmax.f32 %v1986_v14, %v1640_v24  ;;  %v1833_v16 = vpop.f32.mrb[39].mxu1  ;;  %v2174_v25 = vld [vmem:[#allocation2 + $0xa8] sm:$0xff] }
 0x318   : > { %v3735_v2 = vmax.f32 %v2132_v47, %v1833_v16 }
 0x319   : > { %v2098_v20 = vmax.f32 %v2025_v42, %v1829_v0  ;;  %v2026_v38 = vmax.f32 %v1953_v33, %v1831_v8 }
 0x31b   : > { %v2203_v18 = vmax.f32 %v2171_v26, %v2098_v20  ;;  %v2099_v44 = vmax.f32 %v2026_v38, %v1833_v16  ;;  %v1644_v7 = vpop.f32.mrb[40].mxu0 }
 0x31c   : > { %v1904_v36 = vmax.f32 %v3705_v6, %v1644_v7  ;;  %v1837_v43 = vpop.f32.mrb[40].mxu1  ;;  %v1646_v37 = vpop.f32.mrb[41].mxu0 }
 0x31d   : > { %2235 = vst [vmem:[#allocation2 + $0x90] sm:$0xff] %v2203_v18  ;;  %v2204_v45 = vmax.f32 %v2172_v34, %v2099_v44  ;;  %v2047_v41 = vmax.f32 %v3707_v48, %v1837_v43  ;;  %v1954_v14 = vmax.f32 %v1644_v7, %v1646_v37  ;;  %v1974_v4 = vmax.f32 %v3709_v40, %v1646_v37  ;;  %v1839_v35 = vpop.f32.mrb[41].mxu1  ;;  %v1648_v47 = vpop.f32.mrb[42].mxu0  ;;  %v2173_v48 = vld [vmem:[#allocation2 + $0xa0] sm:$0xff] }
 0x31e   : > { %v2120_v3 = vmax.f32 %v3711_v29, %v1839_v35  ;;  %v1919_v30 = vmax.f32 %v3713_v10, %v1648_v47  ;;  %v1841_v11 = vpop.f32.mrb[42].mxu1  ;;  %v1650_v15 = vpop.f32.mrb[43].mxu0 }
 0x31f   : > { %2236 = vst [vmem:[#allocation2 + $0x98] sm:$0xff] %v2204_v45  ;;  %v2027_v46 = vmax.f32 %v1954_v14, %v1837_v43  ;;  %v2062_v6 = vmax.f32 %v3715_v1, %v1841_v11  ;;  %v1955_v31 = vmax.f32 %v1648_v47, %v1650_v15  ;;  %v1989_v19 = vmax.f32 %v3717_v39, %v1650_v15  ;;  %v1843_v27 = vpop.f32.mrb[43].mxu1  ;;  %v2176_v47 = vld [vmem:[#allocation2 + $0xb8] sm:$0xff] }
 0x320   : > { %v2135_v17 = vmax.f32 %v3719_v23, %v1843_v27 }
 0x321   : > { %v2100_v40 = vmax.f32 %v2027_v46, %v1839_v35  ;;  %v2028_v0 = vmax.f32 %v1955_v31, %v1841_v11 }
 0x323   : > { %v2205_v8 = vmax.f32 %v2173_v48, %v2100_v40  ;;  %v2101_v29 = vmax.f32 %v2028_v0, %v1843_v27  ;;  %v1654_v24 = vpop.f32.mrb[44].mxu0 }
 0x324   : > { %v1905_v10 = vmax.f32 %v3721_v22, %v1654_v24  ;;  %v1847_v42 = vpop.f32.mrb[44].mxu1  ;;  %v1656_v33 = vpop.f32.mrb[45].mxu0  ;;  %v2307_v54 = vld [vmem:[#allocation2 + $0x90] sm:$0xff] (%p1182_p8) }
 0x325   : > { %2237 = vst [vmem:[#allocation2 + $0xa0] sm:$0xff] %v2205_v8  ;;  %v2206_v16 = vmax.f32 %v2174_v25, %v2101_v29  ;;  %v2048_v1 = vmax.f32 %v3723_v9, %v1847_v42  ;;  %v1956_v26 = vmax.f32 %v1654_v24, %v1656_v33  ;;  %v1975_v39 = vmax.f32 %v3725_v21, %v1656_v33  ;;  %v1849_v20 = vpop.f32.mrb[45].mxu1  ;;  %v1658_v38 = vpop.f32.mrb[46].mxu0  ;;  %v2175_v9 = vld [vmem:[#allocation2 + $0xb0] sm:$0xff] }
 0x326   : > { %v2121_v23 = vmax.f32 %v3727_v13, %v1849_v20  ;;  %v1920_v34 = vmax.f32 %v3729_v5, %v1658_v38  ;;  %v1851_v18 = vpop.f32.mrb[46].mxu1  ;;  %v1660_v44 = vpop.f32.mrb[47].mxu0 }
 0x327   : > { %2238 = vst [vmem:[#allocation2 + $0xa8] sm:$0xff] %v2206_v16  ;;  %v2029_v7 = vmax.f32 %v1956_v26, %v1847_v42  ;;  %v2063_v22 = vmax.f32 %v3731_v12, %v1851_v18  ;;  %v1957_v43 = vmax.f32 %v1658_v38, %v1660_v44  ;;  %v1990_v37 = vmax.f32 %v3733_v32, %v1660_v44  ;;  %v1853_v45 = vpop.f32.mrb[47].mxu1  ;;  %v2177_v16 = vld [vmem:[#allocation2 + $0xc0] sm:$0xff]  ;;  %v2178_v38 = vld [vmem:[#allocation2 + $0xc8] sm:$0xff] }
 0x328   : > { %v2136_v14 = vmax.f32 %v3735_v2, %v1853_v45 }
 0x329   : > { %v2102_v21 = vmax.f32 %v2029_v7, %v1849_v20  ;;  %v2030_v35 = vmax.f32 %v1957_v43, %v1851_v18 }
 0x32b   : > { %v2207_v11 = vmax.f32 %v2175_v9, %v2102_v21  ;;  %v2103_v13 = vmax.f32 %v2030_v35, %v1853_v45  ;;  %v1664_v15 = vpop.f32.mrb[48].mxu0 }
 0x32c   : > { %v3753_v5 = vmax.f32 %v1904_v36, %v1664_v15  ;;  %v1857_v46 = vpop.f32.mrb[48].mxu1  ;;  %v1666_v31 = vpop.f32.mrb[49].mxu0  ;;  %v2313_v61 = vld [vmem:[#allocation2 + $0xa0] sm:$0xff] (%p1182_p8) }
 0x32d   : > { %2239 = vst [vmem:[#allocation2 + $0xb0] sm:$0xff] %v2207_v11  ;;  %v2208_v27 = vmax.f32 %v2176_v47, %v2103_v13  ;;  %v3755_v12 = vmax.f32 %v2047_v41, %v1857_v46  ;;  %v1958_v48 = vmax.f32 %v1664_v15, %v1666_v31  ;;  %v3757_v32 = vmax.f32 %v1974_v4, %v1666_v31  ;;  %v1859_v40 = vpop.f32.mrb[49].mxu1  ;;  %v1668_v0 = vpop.f32.mrb[50].mxu0 }
 0x32e   : > { %v3759_v2 = vmax.f32 %v2120_v3, %v1859_v40  ;;  %v3761_v25 = vmax.f32 %v1919_v30, %v1668_v0  ;;  %v1861_v8 = vpop.f32.mrb[50].mxu1  ;;  %v1670_v29 = vpop.f32.mrb[51].mxu0 }
 0x32f   : > { %2240 = vst [vmem:[#allocation2 + $0xb8] sm:$0xff] %v2208_v27  ;;  %v2031_v36 = vmax.f32 %v1958_v48, %v1857_v46  ;;  %v3763_v24 = vmax.f32 %v2062_v6, %v1861_v8  ;;  %v1959_v42 = vmax.f32 %v1668_v0, %v1670_v29  ;;  %v3765_v33 = vmax.f32 %v1989_v19, %v1670_v29  ;;  %v1863_v41 = vpop.f32.mrb[51].mxu1  ;;  %v2179_v27 = vld [vmem:[#allocation2 + $0xd0] sm:$0xff]  ;;  %v2180_v0 = vld [vmem:[#allocation2 + $0xd8] sm:$0xff] }
 0x330   : > { %v3767_v26 = vmax.f32 %v2135_v17, %v1863_v41 }
 0x331   : > { %v2104_v4 = vmax.f32 %v2031_v36, %v1859_v40  ;;  %v2032_v20 = vmax.f32 %v1959_v42, %v1861_v8 }
 0x333   : > { %v2209_v3 = vmax.f32 %v2177_v16, %v2104_v4  ;;  %v2105_v18 = vmax.f32 %v2032_v20, %v1863_v41  ;;  %v1674_v30 = vpop.f32.mrb[52].mxu0 }
 0x334   : > { %v3769_v44 = vmax.f32 %v1905_v10, %v1674_v30  ;;  %v1867_v7 = vpop.f32.mrb[52].mxu1  ;;  %v1676_v43 = vpop.f32.mrb[53].mxu0 }
 0x335   : > { %2241 = vst [vmem:[#allocation2 + $0xc0] sm:$0xff] %v2209_v3  ;;  %v2210_v6 = vmax.f32 %v2178_v38, %v2105_v18  ;;  %v3771_v45 = vmax.f32 %v2048_v1, %v1867_v7  ;;  %v1960_v19 = vmax.f32 %v1674_v30, %v1676_v43  ;;  %v3773_v9 = vmax.f32 %v1975_v39, %v1676_v43  ;;  %v1869_v21 = vpop.f32.mrb[53].mxu1  ;;  %v1678_v17 = vpop.f32.mrb[54].mxu0 }
 0x336   : > { %v3775_v35 = vmax.f32 %v2121_v23, %v1869_v21  ;;  %v3777_v47 = vmax.f32 %v1920_v34, %v1678_v17  ;;  %v1871_v11 = vpop.f32.mrb[54].mxu1  ;;  %v1680_v13 = vpop.f32.mrb[55].mxu0 }
 0x337   : > { %2242 = vst [vmem:[#allocation2 + $0xc8] sm:$0xff] %v2210_v6  ;;  %v2033_v10 = vmax.f32 %v1960_v19, %v1867_v7  ;;  %v3779_v15 = vmax.f32 %v2063_v22, %v1871_v11  ;;  %v1961_v46 = vmax.f32 %v1678_v17, %v1680_v13  ;;  %v3781_v31 = vmax.f32 %v1990_v37, %v1680_v13  ;;  %v1873_v1 = vpop.f32.mrb[55].mxu1  ;;  %v2182_v17 = vld [vmem:[#allocation2 + $0xe8] sm:$0xff] }
 0x338   : > { %v3783_v48 = vmax.f32 %v2136_v14, %v1873_v1 }
 0x339   : > { %v2106_v39 = vmax.f32 %v2033_v10, %v1869_v21  ;;  %v2034_v40 = vmax.f32 %v1961_v46, %v1871_v11  ;;  %v2547_v46 = vld [vmem:[%s3797_s15] ss:$0 sm:$0xff] }
 0x33b   : > { %v2211_v23 = vmax.f32 %v2179_v27, %v2106_v39  ;;  %v2107_v8 = vmax.f32 %v2034_v40, %v1873_v1  ;;  %v1684_v34 = vpop.f32.mrb[56].mxu0 }
 0x33c   : > { %v1908_v29 = vmax.f32 %v3753_v5, %v1684_v34  ;;  %v1877_v36 = vpop.f32.mrb[56].mxu1  ;;  %v1686_v42 = vpop.f32.mrb[57].mxu0 }
 0x33d   : > { %2243 = vst [vmem:[#allocation2 + $0xd0] sm:$0xff] %v2211_v23  ;;  %v2212_v22 = vmax.f32 %v2180_v0, %v2107_v8  ;;  %v2051_v37 = vmax.f32 %v3755_v12, %v1877_v36  ;;  %v1962_v41 = vmax.f32 %v1684_v34, %v1686_v42  ;;  %v1978_v16 = vmax.f32 %v3757_v32, %v1686_v42  ;;  %v1879_v14 = vpop.f32.mrb[57].mxu1  ;;  %v1688_v4 = vpop.f32.mrb[58].mxu0  ;;  %v2181_v12 = vld [vmem:[#allocation2 + $0xe0] sm:$0xff] }
 0x33e   : > { %v2124_v20 = vmax.f32 %v3759_v2, %v1879_v14  ;;  %v1923_v38 = vmax.f32 %v3761_v25, %v1688_v4  ;;  %v1881_v3 = vpop.f32.mrb[58].mxu1  ;;  %v1690_v18 = vpop.f32.mrb[59].mxu0 }
 0x33f   : > { %2244 = vst [vmem:[#allocation2 + $0xd8] sm:$0xff] %v2212_v22  ;;  %v2035_v5 = vmax.f32 %v1962_v41, %v1877_v36  ;;  %v2066_v30 = vmax.f32 %v3763_v24, %v1881_v3  ;;  %v1963_v7 = vmax.f32 %v1688_v4, %v1690_v18  ;;  %v1993_v43 = vmax.f32 %v3765_v33, %v1690_v18  ;;  %v1883_v6 = vpop.f32.mrb[59].mxu1 }
 0x340   : > { %v2139_v32 = vmax.f32 %v3767_v26, %v1883_v6 }
 0x341   : > { %v2108_v19 = vmax.f32 %v2035_v5, %v1879_v14  ;;  %v2036_v21 = vmax.f32 %v1963_v7, %v1881_v3  ;;  %v2183_v3 = vld [vmem:[#allocation2 + $0xf0] sm:$0xff] }
 0x343   : > { %v2213_v2 = vmax.f32 %v2181_v12, %v2108_v19  ;;  %v2109_v25 = vmax.f32 %v2036_v21, %v1883_v6  ;;  %v1694_v24 = vpop.f32.mrb[60].mxu0  ;;  %v2556_v21 = vld [vmem:[%s3797_s15 + $0x3] ss:$0 sm:$0xff] }
 0x344   : > { %v1909_v11 = vmax.f32 %v3769_v44, %v1694_v24  ;;  %v1887_v33 = vpop.f32.mrb[60].mxu1  ;;  %v1696_v13 = vpop.f32.mrb[61].mxu0 }
 0x345   : > { %2245 = vst [vmem:[#allocation2 + $0xe0] sm:$0xff] %v2213_v2  ;;  %v2214_v10 = vmax.f32 %v2182_v17, %v2109_v25  ;;  %v2052_v26 = vmax.f32 %v3771_v45, %v1887_v33  ;;  %v1964_v1 = vmax.f32 %v1694_v24, %v1696_v13  ;;  %v1979_v27 = vmax.f32 %v3773_v9, %v1696_v13  ;;  %v1889_v39 = vpop.f32.mrb[61].mxu1  ;;  %v1698_v40 = vpop.f32.mrb[62].mxu0  ;;  %v2550_v45 = vld [vmem:[%s3797_s15 + $0x1] ss:$0 sm:$0xff]  ;;  %v2184_v17 = vld [vmem:[#allocation2 + $0xf8] sm:$0xff] }
 0x346   : > { %v1910_v0 = vmax.f32 %v1908_v29, %v1909_v11  ;;  %v2125_v23 = vmax.f32 %v3775_v35, %v1889_v39  ;;  %v1924_v8 = vmax.f32 %v3777_v47, %v1698_v40  ;;  %v1891_v44 = vpop.f32.mrb[62].mxu1  ;;  %v1700_v34 = vpop.f32.mrb[63].mxu0  ;;  %v2553_v35 = vld [vmem:[%s3797_s15 + $0x2] ss:$0 sm:$0xff] }
 0x347   : > { %2246 = vst [vmem:[#allocation2 + $0xe8] sm:$0xff] %v2214_v10  ;;  %v2053_v36 = vmax.f32 %v2051_v37, %v2052_v26  ;;  %v1980_v42 = vmax.f32 %v1978_v16, %v1979_v27  ;;  %v2037_v22 = vmax.f32 %v1964_v1, %v1887_v33  ;;  %v2067_v41 = vmax.f32 %v3779_v15, %v1891_v44  ;;  %v1893_v14 = vpop.f32.mrb[63].mxu1  ;;  %v2249_v10 = vld [vmem:[#allocation3] sm:$0xff] }
 0x348   : > { %v1932_v9 = vmul.f32 %v2547_v46, %v1910_v0  ;;  %v2126_v4 = vmax.f32 %v2124_v20, %v2125_v23  ;;  %v1925_v29 = vmax.f32 %v1923_v38, %v1924_v8  ;;  %v1965_v18 = vmax.f32 %v1698_v40, %v1700_v34  ;;  %v2259_v40 = vld [vmem:[#allocation2 + $0x10] sm:$0xff] (%p1182_p8)  ;;  %v2265_v0 = vld [vmem:[#allocation2 + $0x20] sm:$0xff] (%p1182_p8) }
 0x349   : > { %v2110_v5 = vmax.f32 %v2037_v22, %v1889_v39  ;;  %v2068_v7 = vmax.f32 %v2066_v30, %v2067_v41  ;;  %v1994_v47 = vmax.f32 %v3781_v31, %v1700_v34  ;;  %v2003_v6 = vmul.f32 %v2550_v45, %v1980_v42  ;;  %v2271_v34 = vld [vmem:[#allocation2 + $0x30] sm:$0xff] (%p1182_p8) }
 0x34a   : > { %v2038_v12 = vmax.f32 %v1965_v18, %v1891_v44  ;;  %v2140_v37 = vmax.f32 %v3783_v48, %v1893_v14  ;;  %v1933_v19 = vmul.f32 %v2547_v46, %v1925_v29  ;;  %v2076_v2 = vmul.f32 %v2553_v35, %v2053_v36  ;;  %v2250_v46 = vld [vmem:[#allocation3 + $0x8] sm:$0xff]  ;;  %v2277_v36 = vld [vmem:[#allocation2 + $0x40] sm:$0xff] (%p1182_p8)  ;;  %v2283_v41 = vld [vmem:[#allocation2 + $0x50] sm:$0xff] (%p1182_p8) }
 0x34b   : > { %v2215_v16 = vmax.f32 %v2183_v3, %v2110_v5  ;;  %v1995_v15 = vmax.f32 %v1993_v43, %v1994_v47  ;;  %v2005_v25 = vadd.f32 %v2003_v6, %v1932_v9  ;;  %v2149_v33 = vmul.f32 %v2556_v21, %v2126_v4  ;;  %v2289_v9 = vld [vmem:[#allocation2 + $0x60] sm:$0xff] (%p1182_p8)  ;;  %v2295_v29 = vld [vmem:[#allocation2 + $0x70] sm:$0xff] (%p1182_p8)  ;;  %v2284_v6 = vld [vmem:[#allocation2 + $0x58] sm:$0xff] (%p1182_p8) }
 0x34c   : > { %v2111_v20 = vmax.f32 %v2038_v12, %v1893_v14  ;;  %v2141_v24 = vmax.f32 %v2139_v32, %v2140_v37  ;;  %v2077_v13 = vmul.f32 %v2553_v35, %v2068_v7  ;;  %v2255_v32 = vld [vmem:[#allocation2] sm:$0xff] (%p1182_p8)  ;;  %v2261_v8 = vmul.f32 (%p1182_p8), 0.13550106, %v2259_v40  ;;  %v2319_v12 = vld [vmem:[#allocation2 + $0xb0] sm:$0xff] (%p1182_p8) }
 0x34d   : > { %2247 = vst [vmem:[#allocation2 + $0xf0] sm:$0xff] %v2215_v16  ;;  %v2004_v38 = vmul.f32 %v2550_v45, %v1995_v15  ;;  %v2078_v11 = vadd.f32 %v2076_v2, %v2005_v25  ;;  %v2257_v23 = vmul.f32 (%p1182_p8), 0.1295636, %v2255_v32  ;;  %v2267_v44 = vmul.f32 (%p1182_p8), -0.040960558, %v2265_v0  ;;  %v2301_v5 = vld [vmem:[#allocation2 + $0x80] sm:$0xff] (%p1182_p8) }
 0x34e   : > { %v2216_v30 = vmax.f32 %v2184_v17, %v2111_v20  ;;  %v2150_v1 = vmul.f32 %v2556_v21, %v2141_v24  ;;  %v2273_v22 = vmul.f32 (%p1182_p8), -0.077188544, %v2271_v34  ;;  %v2279_v14 = vmul.f32 (%p1182_p8), 0.038094174, %v2277_v36  ;;  %v2290_v21 = vld [vmem:[#allocation2 + $0x68] sm:$0xff] (%p1182_p8)  ;;  %v2325_v17 = vld [vmem:[#allocation2 + $0xc0] sm:$0xff] (%p1182_p8) }
 0x34f   : > { %v2006_v31 = vadd.f32 %v2004_v38, %v1933_v19  ;;  %v2151_v26 = vadd.f32 %v2149_v33, %v2078_v11  ;;  %v2263_v42 = vadd.f32 (%p1182_p8), %v2261_v8, %v2257_v23  ;;  %v2285_v3 = vmul.f32 (%p1182_p8), 0.001888919, %v2283_v41  ;;  %v2296_v38 = vld [vmem:[#allocation2 + $0x78] sm:$0xff] (%p1182_p8)  ;;  %v2331_v11 = vld [vmem:[#allocation2 + $0xd0] sm:$0xff] (%p1182_p8)  ;;  %v2314_v8 = vld [vmem:[#allocation2 + $0xa8] sm:$0xff] (%p1182_p8) }
 0x350   : > { %2248 = vst [vmem:[#allocation2 + $0xf8] sm:$0xff] %v2216_v30  ;;  %v2291_v35 = vmul.f32 (%p1182_p8), 0.057455655, %v2289_v9  ;;  %v2297_v50 = vmul.f32 (%p1182_p8), -0.075327896, %v2295_v29  ;;  %v2270_v37 = vadd.f32 (%p1182_p8), %v2268_v56, %v2264_v62  ;;  %v2326_v9 = vld [vmem:[#allocation2 + $0xc8] sm:$0xff] (%p1182_p8) }
 0x351   : > { %v2079_v48 = vadd.f32 %v2077_v13, %v2006_v31  ;;  %v2251_v43 = vadd.f32 %v2249_v10, %v2151_v26  ;;  %1184 = sbr.rel (!%p1182_p8) target bundleno = 435 (0x1b3), region = 48  ;;  %v2269_v45 = vadd.f32 (%p1182_p8), %v2267_v44, %v2263_v42  ;;  %v2303_v59 = vmul.f32 (%p1182_p8), 0.023016622, %v2301_v5  ;;  %v2302_v10 = vld [vmem:[#allocation2 + $0x88] sm:$0xff] (%p1182_p8)  ;;  %v2337_v26 = vld [vmem:[#allocation2 + $0xe0] sm:$0xff] (%p1182_p8) }
 0x352   :  { %v2309_v47 = vmul.f32 (%p1182_p8), -0.14893436, %v2307_v54  ;;  %v2280_v16 = vmul.f32 (%p1182_p8), 0.038094174, %v2278_v60  ;;  %v2315_v15 = vmul.f32 (%p1182_p8), -0.09143197, %v2313_v61  ;;  %v2276_v2 = vadd.f32 (%p1182_p8), %v2274_v63, %v2270_v37 }
 0x353   : > { %v2152_v27 = vadd.f32 %v2150_v1, %v2079_v48  ;;  %2253 = vst [vmem:[#allocation3] sm:$0xff] %v2251_v43  ;;  %v2275_v4 = vadd.f32 (%p1182_p8), %v2273_v22, %v2269_v45  ;;  %v2286_v25 = vmul.f32 (%p1182_p8), 0.001888919, %v2284_v6  ;;  %v2321_v24 = vmul.f32 (%p1182_p8), 0.17661206, %v2319_v12  ;;  %v2320_v22 = vld [vmem:[#allocation2 + $0xb8] sm:$0xff] (%p1182_p8) }
 0x354   :  { %v2282_v33 = vadd.f32 (%p1182_p8), %v2280_v16, %v2276_v2  ;;  %v2292_v30 = vmul.f32 (%p1182_p8), 0.057455655, %v2290_v21  ;;  %v2327_v31 = vmul.f32 (%p1182_p8), -0.095966354, %v2325_v17  ;;  %v2298_v1 = vmul.f32 (%p1182_p8), -0.075327896, %v2296_v38 }
 0x355   : > { %v2252_v39 = vadd.f32 %v2250_v46, %v2152_v27  ;;  %v2281_v18 = vadd.f32 (%p1182_p8), %v2279_v14, %v2275_v4  ;;  %v2333_v43 = vmul.f32 (%p1182_p8), -0.043131996, %v2331_v11  ;;  %v2308_v27 = vld [vmem:[#allocation2 + $0x98] sm:$0xff] (%p1182_p8)  ;;  %v2304_v40 = vmul.f32 (%p1182_p8), 0.023016622, %v2302_v10 }
 0x356   :  { %v2288_v48 = vadd.f32 (%p1182_p8), %v2286_v25, %v2282_v33  ;;  %v2339_v23 = vmul.f32 (%p1182_p8), 0.081523895, %v2337_v26  ;;  %v2310_v34 = vmul.f32 (%p1182_p8), -0.14893436, %v2308_v27  ;;  %v2316_v45 = vmul.f32 (%p1182_p8), -0.09143197, %v2314_v8 }
 0x357   : > { %2254 = vst [vmem:[#allocation3 + $0x8] sm:$0xff] %v2252_v39  ;;  %v2287_v49 = vadd.f32 (%p1182_p8), %v2285_v3, %v2281_v18  ;;  %v2343_v39 = vld [vmem:[#allocation2 + $0xf0] sm:$0xff] (%p1182_p8)  ;;  %v2322_v29 = vmul.f32 (%p1182_p8), 0.17661206, %v2320_v22  ;;  %v2328_v28 = vmul.f32 (%p1182_p8), -0.095966354, %v2326_v9 }
 0x358   :  { %v2294_v32 = vadd.f32 %v2292_v30, %v2288_v48  ;;  %v2345_v42 = vmul.f32 0.11996739, %v2343_v39  ;;  %v2344_v54 = vld [vmem:[#allocation2 + $0xf8] sm:$0xff] }
 0x359   :  { %v2293_v58 = vadd.f32 %v2291_v35, %v2287_v49  ;;  %v2332_v35 = vld [vmem:[#allocation2 + $0xd8] sm:$0xff] }
 0x35a   :  { %v2300_v44 = vadd.f32 %v2298_v1, %v2294_v32  ;;  %v2349_v4 = vld [vmem:[#allocation3] sm:$0xff]  ;;  %v2334_v52 = vmul.f32 -0.043131996, %v2332_v35 }
 0x35b   :  { %v2299_v7 = vadd.f32 %v2297_v50, %v2293_v58  ;;  %v2338_v50 = vld [vmem:[#allocation2 + $0xe8] sm:$0xff] }
 0x35c   :  { %v2306_v41 = vadd.f32 %v2304_v40, %v2300_v44  ;;  %v2340_v56 = vmul.f32 0.081523895, %v2338_v50 }
 0x35d   :  { %v2305_v19 = vadd.f32 %v2303_v59, %v2299_v7  ;;  %v2346_v59 = vmul.f32 0.11996739, %v2344_v54 }
 0x35e   :  { %v2312_v3 = vadd.f32 %v2310_v34, %v2306_v41  ;;  %v2350_v63 = vld [vmem:[#allocation3 + $0x8] sm:$0xff] }
 0x35f   :  { %v2311_v20 = vadd.f32 %v2309_v47, %v2305_v19 }
 0x360   :  { %v2318_v5 = vadd.f32 %v2316_v45, %v2312_v3 }
 0x361   :  { %v2317_v13 = vadd.f32 %v2315_v15, %v2311_v20 }
 0x362   :  { %v2324_v51 = vadd.f32 %v2322_v29, %v2318_v5 }
 0x363   :  { %v2323_v46 = vadd.f32 %v2321_v24, %v2317_v13 }
 0x364   :  { %v2330_v55 = vadd.f32 %v2328_v28, %v2324_v51 }
 0x365   :  { %v2329_v0 = vadd.f32 %v2327_v31, %v2323_v46 }
 0x366   :  { %v2336_v58 = vadd.f32 %v2334_v52, %v2330_v55 }
 0x367   :  { %v2335_v36 = vadd.f32 %v2333_v43, %v2329_v0 }
 0x368   :  { %v2342_v61 = vadd.f32 %v2340_v56, %v2336_v58 }
 0x369   :  { %v2341_v14 = vadd.f32 %v2339_v23, %v2335_v36 }
 0x36a   :  { %v2348_v7 = vadd.f32 %v2346_v59, %v2342_v61 }
 0x36b   :  { %v2347_v18 = vadd.f32 %v2345_v42, %v2341_v14 }
 0x36c   :  { %v2352_v47 = vadd.f32 %v2350_v63, %v2348_v7 }
 0x36d   :  { %v2351_v49 = vadd.f32 %v2349_v4, %v2347_v18 }
 0x36e   :  { %v2354_v6 = vmul.f32 0.97076505, %v2352_v47 }
 0x36f   :  { %v2353_v53 = vmul.f32 0.97076505, %v2351_v49 }
 0x370   :  { %v2356_v12 = vadd.f32 -0.13775335, %v2354_v6 }
 0x371   :  { %v2355_v57 = vadd.f32 -0.13775335, %v2353_v53 }
 0x372   :  { %v2558_v37 = vmul.f32 -0.1, %v2356_v12 }
 0x373   :  { %v2557_v60 = vmul.f32 -0.1, %v2355_v57 }
 0x374   :  { %v2363_v16 = vmul.f32 1.442695, %v2558_v37 }
 0x375   :  { %v2361_v62 = vmul.f32 1.442695, %v2557_v60 }
 0x377   :  { %2876 = vpow2.f32 %v2361_v62 }
 0x378   :  { %2878 = vpow2.f32 %v2363_v16 }
 0x381   :  { %v2877_v19 = vpop.eup %2876 }
 0x382   :  { %v2365_v15 = vadd.f32 1.0, %v2877_v19  ;;  %v2879_v21 = vpop.eup %2878 }
 0x383   :  { %v2366_v17 = vadd.f32 1.0, %v2879_v21 }
 0x384   :  { %2880 = vrcp.f32 %v2365_v15 }
 0x385   :  { %2882 = vrcp.f32 %v2366_v17 }
 0x38e   :  { %v2881_v2 = vpop.eup %2880 }
 0x38f   :  { %2371 = vst [vmem:[%s3823_s3] sm:$0xff] %v2881_v2  ;;  %v2883_v25 = vpop.eup %2882 }
 0x390   :  { %2372 = vst [vmem:[%s3823_s3 + $0x8] sm:$0xff] %v2883_v25 }
 0x391   :  { %2377 = vsyncpa [#allocation5], 1 }

</bundles_post_ra>
